<compile_context>
chip_gen: v7x
topology: tpu7x:2x2x1
jax: 0.10.0
libtpu: 0.0.40
codegen_flags: <defaults>
</compile_context>

<pallas_src>
import jax
import jax.numpy as jnp
from jax import lax
from jax.experimental import pallas as pl
from jax.experimental.pallas import tpu as pltpu

# Small, module-consistent shapes (inputSize=14, numClasses=8; hidden shrunk to 32, batch=8).
T, B, I, H, C = 8, 8, 14, 32, 8
BN_EPS = 1e-5


def net_slstm_kernel(x_ref, wih1_ref, whh1_ref, b1_ref,
                     wih2_ref, whh2_ref, b2_ref,
                     gamma_ref, beta_ref,
                     fcw_ref, fcb_ref, thr_ref,
                     out_ref):
    # ---- loop-invariant loads / broadcasts, hoisted once (JAX does not CSE broadcast_in_dim) --
    whh1 = whh1_ref[...]                                   # [H, 4H]  bf16
    wih2 = wih2_ref[...]                                   # [H, 4H]  bf16
    whh2 = whh2_ref[...]                                   # [H, 4H]  bf16
    gamma = gamma_ref[...]                                 # [1, H]   f32
    beta = beta_ref[...]                                   # [1, H]   f32
    thr1_b = jnp.full((B, H), thr_ref[0], jnp.float32)     # hoisted threshold broadcasts
    thr2_b = jnp.full((B, H), thr_ref[1], jnp.float32)
    b2_b = jnp.broadcast_to(b2_ref[...], (B, 4 * H))       # [B, 4H]  f32

    # ---- hoisted non-recurrent projection of layer-1 input (one matmul for all T steps) -------
    # bias b1 = b_ih1 + b_hh1 is folded in here once; x and wih1 are bf16, accumulation f32.
    zx1 = (jnp.dot(x_ref[...], wih1_ref[...], preferred_element_type=jnp.float32)
           + b1_ref[...])                                  # [T*B, 4H] f32

    def slstm_update(z, syn, reset, thr_b):
        # Full-width activations: one sigmoid + one tanh over the whole [B, 4H] pre-activation
        # (gate order i, f, g, o), then static lane slices to extract the gates.
        sig = jax.nn.sigmoid(z)
        tnh = jnp.tanh(z)
        i_g = sig[:, 0 * H:1 * H]
        f_g = sig[:, 1 * H:2 * H]
        g_g = tnh[:, 2 * H:3 * H]
        o_g = sig[:, 3 * H:4 * H]
        syn_new = f_g * syn + i_g * g_g                    # LSTM cell state (c)
        h_new = o_g * jnp.tanh(syn_new)                    # LSTM hidden     (h)
        mem_new = h_new - reset * thr_b                    # reset_mechanism='subtract'
        spk = (mem_new - thr_b > 0.0).astype(jnp.float32)  # fire on post-reset mem
        return spk, syn_new, mem_new

    syn1 = jnp.zeros((B, H), jnp.float32)
    mem1 = jnp.zeros((B, H), jnp.float32)
    syn2 = jnp.zeros((B, H), jnp.float32)
    mem2 = jnp.zeros((B, H), jnp.float32)
    # reset_t == spk_{t-1}; the step-0 reset is heaviside(mem_init - thr) = heaviside(-thr).
    spk1 = (0.0 - thr1_b > 0.0).astype(jnp.float32)
    spk2 = (0.0 - thr2_b > 0.0).astype(jnp.float32)
    acc = jnp.zeros((B, H), jnp.float32)

    # ---- fully unrolled time loop (T=8, static) ------------------------------------------------
    for t in range(T):
        # Layer 1: only the recurrent dot stays on the per-step critical path (bf16 MXU, f32 acc).
        z1 = zx1[t * B:(t + 1) * B, :] + jnp.dot(
            mem1.astype(jnp.bfloat16), whh1, preferred_element_type=jnp.float32)
        spk1, syn1, mem1 = slstm_update(z1, syn1, spk1, thr1_b)

        # BatchNorm1d(H), training-mode per-step batch statistics. spk1 is binary, so the
        # biased variance is Bernoulli: var = mu - mu^2 (one cross-sublane reduction, not two).
        mu = jnp.mean(spk1, axis=0, keepdims=True)         # [1, H]
        var = mu - mu * mu
        scale = gamma * lax.rsqrt(var + BN_EPS)            # [1, H]
        shift = beta - mu * scale                          # [1, H]
        spk1_bn = spk1 * scale + shift

        # Layer 2: two direct bf16 dots — no VMEM staging buffer / store->load hazard.
        z2 = (jnp.dot(spk1_bn.astype(jnp.bfloat16), wih2,
                      preferred_element_type=jnp.float32)
              + jnp.dot(mem2.astype(jnp.bfloat16), whh2,
                        preferred_element_type=jnp.float32)
              + b2_b)
        spk2, syn2, mem2 = slstm_update(z2, syn2, spk2, thr2_b)

        acc = acc + mem2                                   # running sum of mem2 over time

    # 1/T is folded into fcw host-side: out = (sum_t mem2) @ (fcw / T) + fcb.
    out_ref[...] = (jnp.dot(acc.astype(jnp.bfloat16), fcw_ref[...],
                            preferred_element_type=jnp.float32)
                    + fcb_ref[...])                        # [B, C]


def net_slstm_forward(x, params):
    vspec = pl.BlockSpec(memory_space=pltpu.MemorySpace.VMEM)
    sspec = pl.BlockSpec(memory_space=pltpu.MemorySpace.SMEM)
    # Free wrapper-side layout prep: time-major [T, B, I] -> [T*B, I] rows (bf16 for the MXU) so
    # the kernel can do the hoisted layer-1 projection as a single matmul.
    x2d = x.reshape(T * B, I).astype(jnp.bfloat16)
    return pl.pallas_call(
        net_slstm_kernel,
        out_shape=jax.ShapeDtypeStruct((B, C), jnp.float32),
        in_specs=[vspec] * 11 + [sspec],       # x + 10 VMEM params, thresholds in SMEM
        out_specs=vspec,
    )(x2d, *params)


def init_params(key):
    """Deterministic init mirroring PyTorch defaults (LSTMCell / Linear uniform bounds)."""
    ks = jax.random.split(key, 10)
    bound = 1.0 / float(jnp.sqrt(jnp.float32(H)))

    def u(k, shape):
        return jax.random.uniform(k, shape, jnp.float32, minval=-bound, maxval=bound)

    # SLSTM1's LSTMCell(input=I, hidden=H)
    wih1 = u(ks[0], (4 * H, I))
    whh1 = u(ks[1], (4 * H, H))
    b1 = u(ks[2], (4 * H,)) + u(ks[3], (4 * H,))           # b_ih + b_hh
    # SLSTM2's LSTMCell(input=H, hidden=H)
    wih2 = u(ks[4], (4 * H, H))
    whh2 = u(ks[5], (4 * H, H))
    b2 = u(ks[6], (4 * H,)) + u(ks[7], (4 * H,))
    # BatchNorm1d(H): weight=1, bias=0 (PyTorch default)
    gamma = jnp.ones((1, H), jnp.float32)
    beta = jnp.zeros((1, H), jnp.float32)
    # Linear(H, C)
    fcw = u(ks[8], (C, H))
    fcb = u(ks[9], (C,))
    # learn_threshold=True, initialized to 1.0 for both SLSTMs
    thr = jnp.array([1.0, 1.0], jnp.float32)

    # Pre-transpose to [in, out]; weights pre-cast to bf16 (MXU native path); 1/T folded into fcw.
    return (wih1.T.astype(jnp.bfloat16),
            whh1.T.astype(jnp.bfloat16),
            b1.reshape(1, 4 * H),
            wih2.T.astype(jnp.bfloat16),
            whh2.T.astype(jnp.bfloat16),
            b2.reshape(1, 4 * H),
            gamma, beta,
            (fcw.T / T).astype(jnp.bfloat16),
            fcb.reshape(1, C),
            thr)


if __name__ == "__main__":
    key = jax.random.PRNGKey(0)
    kx, kp = jax.random.split(key)
    x = jax.random.normal(kx, (T, B, I), jnp.float32)      # [time, batch, features]
    params = init_params(kp)
    out = net_slstm_forward(x, params)
    out = jax.block_until_ready(out)
    assert out.shape == (B, C) and out.dtype == jnp.float32
    print("KERNEL_OK")
</pallas_src>

<mosaic_0001>
module attributes {stable_mosaic.version = 11 : i64} {
  func.func @net_slstm_kernel(%arg0: memref<64x14xbf16, #tpu.memory_space<vmem>>, %arg1: memref<14x128xbf16, #tpu.memory_space<vmem>>, %arg2: memref<32x128xbf16, #tpu.memory_space<vmem>>, %arg3: memref<1x128xf32, #tpu.memory_space<vmem>>, %arg4: memref<32x128xbf16, #tpu.memory_space<vmem>>, %arg5: memref<32x128xbf16, #tpu.memory_space<vmem>>, %arg6: memref<1x128xf32, #tpu.memory_space<vmem>>, %arg7: memref<1x32xf32, #tpu.memory_space<vmem>>, %arg8: memref<1x32xf32, #tpu.memory_space<vmem>>, %arg9: memref<32x8xbf16, #tpu.memory_space<vmem>>, %arg10: memref<1x8xf32, #tpu.memory_space<vmem>>, %arg11: memref<2xf32, #tpu.memory_space<smem>>, %arg12: memref<8x8xf32, #tpu.memory_space<vmem>>) attributes {dimension_semantics = [], scalar_prefetch = 0 : i64, scratch_operands = 0 : i64, tpu.core_type = #tpu.core_type<tc>} {
    %c0 = arith.constant 0 : index
    %c0_0 = arith.constant 0 : index
    %0 = vector.load %arg2[%c0, %c0_0] : memref<32x128xbf16, #tpu.memory_space<vmem>>, vector<32x128xbf16>
    %c0_1 = arith.constant 0 : index
    %c0_2 = arith.constant 0 : index
    %1 = vector.load %arg4[%c0_1, %c0_2] : memref<32x128xbf16, #tpu.memory_space<vmem>>, vector<32x128xbf16>
    %c0_3 = arith.constant 0 : index
    %c0_4 = arith.constant 0 : index
    %2 = vector.load %arg5[%c0_3, %c0_4] : memref<32x128xbf16, #tpu.memory_space<vmem>>, vector<32x128xbf16>
    %c0_5 = arith.constant 0 : index
    %c0_6 = arith.constant 0 : index
    %3 = vector.load %arg7[%c0_5, %c0_6] : memref<1x32xf32, #tpu.memory_space<vmem>>, vector<1x32xf32>
    %c0_7 = arith.constant 0 : index
    %c0_8 = arith.constant 0 : index
    %4 = vector.load %arg8[%c0_7, %c0_8] : memref<1x32xf32, #tpu.memory_space<vmem>>, vector<1x32xf32>
    %c0_9 = arith.constant 0 : index
    %5 = memref.load %arg11[%c0_9] : memref<2xf32, #tpu.memory_space<smem>>
    %6 = vector.broadcast %5 : f32 to vector<8x32xf32>
    %c1 = arith.constant 1 : index
    %7 = memref.load %arg11[%c1] : memref<2xf32, #tpu.memory_space<smem>>
    %8 = vector.broadcast %7 : f32 to vector<8x32xf32>
    %c0_10 = arith.constant 0 : index
    %c0_11 = arith.constant 0 : index
    %9 = vector.load %arg6[%c0_10, %c0_11] : memref<1x128xf32, #tpu.memory_space<vmem>>, vector<1x128xf32>
    %10 = vector.shape_cast %9 : vector<1x128xf32> to vector<1x128xf32>
    %11 = vector.broadcast %10 : vector<1x128xf32> to vector<8x128xf32>
    %c0_12 = arith.constant 0 : index
    %c0_13 = arith.constant 0 : index
    %12 = vector.load %arg0[%c0_12, %c0_13] : memref<64x14xbf16, #tpu.memory_space<vmem>>, vector<64x14xbf16>
    %c0_14 = arith.constant 0 : index
    %c0_15 = arith.constant 0 : index
    %13 = vector.load %arg1[%c0_14, %c0_15] : memref<14x128xbf16, #tpu.memory_space<vmem>>, vector<14x128xbf16>
    %cst = arith.constant dense<0.000000e+00> : vector<64x128xf32>
    %14 = tpu.matmul %12, %13, %cst {dimension_numbers = #tpu.dot_dimension_numbers<[1], [0], [0], [1], [0, 0, 1, 1], [], []>} : vector<64x14xbf16>, vector<14x128xbf16>, vector<64x128xf32> -> vector<64x128xf32>
    %c0_16 = arith.constant 0 : index
    %c0_17 = arith.constant 0 : index
    %15 = vector.load %arg3[%c0_16, %c0_17] : memref<1x128xf32, #tpu.memory_space<vmem>>, vector<1x128xf32>
    %16 = vector.broadcast %15 : vector<1x128xf32> to vector<64x128xf32>
    %17 = arith.addf %14, %16 : vector<64x128xf32>
    %cst_18 = arith.constant 0.000000e+00 : f32
    %18 = vector.broadcast %cst_18 : f32 to vector<8x32xf32>
    %cst_19 = arith.constant 0.000000e+00 : f32
    %19 = vector.broadcast %cst_19 : f32 to vector<8x32xf32>
    %cst_20 = arith.constant 0.000000e+00 : f32
    %20 = vector.broadcast %cst_20 : f32 to vector<8x32xf32>
    %cst_21 = arith.constant 0.000000e+00 : f32
    %21 = vector.broadcast %cst_21 : f32 to vector<8x32xf32>
    %cst_22 = arith.constant 0.000000e+00 : f32
    %22 = vector.broadcast %cst_22 : f32 to vector<8x32xf32>
    %23 = arith.subf %22, %6 : vector<8x32xf32>
    %cst_23 = arith.constant 0.000000e+00 : f32
    %24 = vector.broadcast %cst_23 : f32 to vector<8x32xf32>
    %25 = arith.cmpf ogt, %23, %24 : vector<8x32xf32>
    %26 = arith.extui %25 : vector<8x32xi1> to vector<8x32xi32>
    %27 = arith.sitofp %26 : vector<8x32xi32> to vector<8x32xf32>
    %cst_24 = arith.constant 0.000000e+00 : f32
    %28 = vector.broadcast %cst_24 : f32 to vector<8x32xf32>
    %29 = arith.subf %28, %8 : vector<8x32xf32>
    %cst_25 = arith.constant 0.000000e+00 : f32
    %30 = vector.broadcast %cst_25 : f32 to vector<8x32xf32>
    %31 = arith.cmpf ogt, %29, %30 : vector<8x32xf32>
    %32 = arith.extui %31 : vector<8x32xi1> to vector<8x32xi32>
    %33 = arith.sitofp %32 : vector<8x32xi32> to vector<8x32xf32>
    %cst_26 = arith.constant 0.000000e+00 : f32
    %34 = vector.broadcast %cst_26 : f32 to vector<8x32xf32>
    %35 = vector.extract_strided_slice %17 {offsets = [0, 0], sizes = [8, 128], strides = [1, 1]} : vector<64x128xf32> to vector<8x128xf32>
    %36 = arith.truncf %19 : vector<8x32xf32> to vector<8x32xbf16>
    %cst_27 = arith.constant dense<0.000000e+00> : vector<8x128xf32>
    %37 = tpu.matmul %36, %0, %cst_27 {dimension_numbers = #tpu.dot_dimension_numbers<[1], [0], [0], [1], [0, 0, 1, 1], [], []>} : vector<8x32xbf16>, vector<32x128xbf16>, vector<8x128xf32> -> vector<8x128xf32>
    %38 = arith.addf %35, %37 : vector<8x128xf32>
    %39 = arith.negf %38 : vector<8x128xf32>
    %40 = math.exp %39 : vector<8x128xf32>
    %cst_28 = arith.constant 1.000000e+00 : f32
    %41 = vector.broadcast %cst_28 : f32 to vector<8x128xf32>
    %42 = arith.addf %41, %40 : vector<8x128xf32>
    %43 = arith.divf %41, %42 : vector<8x128xf32>
    %44 = math.tanh %38 : vector<8x128xf32>
    %45 = vector.extract_strided_slice %43 {offsets = [0, 0], sizes = [8, 32], strides = [1, 1]} : vector<8x128xf32> to vector<8x32xf32>
    %46 = vector.extract_strided_slice %43 {offsets = [0, 32], sizes = [8, 32], strides = [1, 1]} : vector<8x128xf32> to vector<8x32xf32>
    %47 = vector.extract_strided_slice %44 {offsets = [0, 64], sizes = [8, 32], strides = [1, 1]} : vector<8x128xf32> to vector<8x32xf32>
    %48 = vector.extract_strided_slice %43 {offsets = [0, 96], sizes = [8, 32], strides = [1, 1]} : vector<8x128xf32> to vector<8x32xf32>
    %49 = arith.mulf %46, %18 : vector<8x32xf32>
    %50 = arith.mulf %45, %47 : vector<8x32xf32>
    %51 = arith.addf %49, %50 : vector<8x32xf32>
    %52 = math.tanh %51 : vector<8x32xf32>
    %53 = arith.mulf %48, %52 : vector<8x32xf32>
    %54 = arith.mulf %27, %6 : vector<8x32xf32>
    %55 = arith.subf %53, %54 : vector<8x32xf32>
    %56 = arith.subf %55, %6 : vector<8x32xf32>
    %cst_29 = arith.constant 0.000000e+00 : f32
    %57 = vector.broadcast %cst_29 : f32 to vector<8x32xf32>
    %58 = arith.cmpf ogt, %56, %57 : vector<8x32xf32>
    %59 = arith.extui %58 : vector<8x32xi1> to vector<8x32xi32>
    %60 = arith.sitofp %59 : vector<8x32xi32> to vector<8x32xf32>
    %cst_30 = arith.constant dense<0.000000e+00> : vector<32xf32>
    %61 = vector.multi_reduction <add>, %60, %cst_30 [0] : vector<8x32xf32> to vector<32xf32>
    %62 = vector.shape_cast %61 : vector<32xf32> to vector<1x32xf32>
    %cst_31 = arith.constant 8.000000e+00 : f32
    %63 = vector.broadcast %cst_31 : f32 to vector<1x32xf32>
    %64 = arith.divf %62, %63 : vector<1x32xf32>
    %65 = arith.mulf %64, %64 : vector<1x32xf32>
    %66 = arith.subf %64, %65 : vector<1x32xf32>
    %cst_32 = arith.constant 9.99999974E-6 : f32
    %67 = vector.broadcast %cst_32 : f32 to vector<1x32xf32>
    %68 = arith.addf %66, %67 : vector<1x32xf32>
    %69 = math.rsqrt %68 : vector<1x32xf32>
    %70 = arith.mulf %3, %69 : vector<1x32xf32>
    %71 = arith.mulf %64, %70 : vector<1x32xf32>
    %72 = arith.subf %4, %71 : vector<1x32xf32>
    %73 = vector.broadcast %70 : vector<1x32xf32> to vector<8x32xf32>
    %74 = arith.mulf %60, %73 : vector<8x32xf32>
    %75 = vector.broadcast %72 : vector<1x32xf32> to vector<8x32xf32>
    %76 = arith.addf %74, %75 : vector<8x32xf32>
    %77 = arith.truncf %76 : vector<8x32xf32> to vector<8x32xbf16>
    %cst_33 = arith.constant dense<0.000000e+00> : vector<8x128xf32>
    %78 = tpu.matmul %77, %1, %cst_33 {dimension_numbers = #tpu.dot_dimension_numbers<[1], [0], [0], [1], [0, 0, 1, 1], [], []>} : vector<8x32xbf16>, vector<32x128xbf16>, vector<8x128xf32> -> vector<8x128xf32>
    %79 = arith.truncf %21 : vector<8x32xf32> to vector<8x32xbf16>
    %cst_34 = arith.constant dense<0.000000e+00> : vector<8x128xf32>
    %80 = tpu.matmul %79, %2, %cst_34 {dimension_numbers = #tpu.dot_dimension_numbers<[1], [0], [0], [1], [0, 0, 1, 1], [], []>} : vector<8x32xbf16>, vector<32x128xbf16>, vector<8x128xf32> -> vector<8x128xf32>
    %81 = arith.addf %78, %80 : vector<8x128xf32>
    %82 = arith.addf %81, %11 : vector<8x128xf32>
    %83 = arith.negf %82 : vector<8x128xf32>
    %84 = math.exp %83 : vector<8x128xf32>
    %cst_35 = arith.constant 1.000000e+00 : f32
    %85 = vector.broadcast %cst_35 : f32 to vector<8x128xf32>
    %86 = arith.addf %85, %84 : vector<8x128xf32>
    %87 = arith.divf %85, %86 : vector<8x128xf32>
    %88 = math.tanh %82 : vector<8x128xf32>
    %89 = vector.extract_strided_slice %87 {offsets = [0, 0], sizes = [8, 32], strides = [1, 1]} : vector<8x128xf32> to vector<8x32xf32>
    %90 = vector.extract_strided_slice %87 {offsets = [0, 32], sizes = [8, 32], strides = [1, 1]} : vector<8x128xf32> to vector<8x32xf32>
    %91 = vector.extract_strided_slice %88 {offsets = [0, 64], sizes = [8, 32], strides = [1, 1]} : vector<8x128xf32> to vector<8x32xf32>
    %92 = vector.extract_strided_slice %87 {offsets = [0, 96], sizes = [8, 32], strides = [1, 1]} : vector<8x128xf32> to vector<8x32xf32>
    %93 = arith.mulf %90, %20 : vector<8x32xf32>
    %94 = arith.mulf %89, %91 : vector<8x32xf32>
    %95 = arith.addf %93, %94 : vector<8x32xf32>
    %96 = math.tanh %95 : vector<8x32xf32>
    %97 = arith.mulf %92, %96 : vector<8x32xf32>
    %98 = arith.mulf %33, %8 : vector<8x32xf32>
    %99 = arith.subf %97, %98 : vector<8x32xf32>
    %100 = arith.subf %99, %8 : vector<8x32xf32>
    %cst_36 = arith.constant 0.000000e+00 : f32
    %101 = vector.broadcast %cst_36 : f32 to vector<8x32xf32>
    %102 = arith.cmpf ogt, %100, %101 : vector<8x32xf32>
    %103 = arith.extui %102 : vector<8x32xi1> to vector<8x32xi32>
    %104 = arith.sitofp %103 : vector<8x32xi32> to vector<8x32xf32>
    %105 = arith.addf %34, %99 : vector<8x32xf32>
    %106 = vector.extract_strided_slice %17 {offsets = [8, 0], sizes = [8, 128], strides = [1, 1]} : vector<64x128xf32> to vector<8x128xf32>
    %107 = arith.truncf %55 : vector<8x32xf32> to vector<8x32xbf16>
    %cst_37 = arith.constant dense<0.000000e+00> : vector<8x128xf32>
    %108 = tpu.matmul %107, %0, %cst_37 {dimension_numbers = #tpu.dot_dimension_numbers<[1], [0], [0], [1], [0, 0, 1, 1], [], []>} : vector<8x32xbf16>, vector<32x128xbf16>, vector<8x128xf32> -> vector<8x128xf32>
    %109 = arith.addf %106, %108 : vector<8x128xf32>
    %110 = arith.negf %109 : vector<8x128xf32>
    %111 = math.exp %110 : vector<8x128xf32>
    %cst_38 = arith.constant 1.000000e+00 : f32
    %112 = vector.broadcast %cst_38 : f32 to vector<8x128xf32>
    %113 = arith.addf %112, %111 : vector<8x128xf32>
    %114 = arith.divf %112, %113 : vector<8x128xf32>
    %115 = math.tanh %109 : vector<8x128xf32>
    %116 = vector.extract_strided_slice %114 {offsets = [0, 0], sizes = [8, 32], strides = [1, 1]} : vector<8x128xf32> to vector<8x32xf32>
    %117 = vector.extract_strided_slice %114 {offsets = [0, 32], sizes = [8, 32], strides = [1, 1]} : vector<8x128xf32> to vector<8x32xf32>
    %118 = vector.extract_strided_slice %115 {offsets = [0, 64], sizes = [8, 32], strides = [1, 1]} : vector<8x128xf32> to vector<8x32xf32>
    %119 = vector.extract_strided_slice %114 {offsets = [0, 96], sizes = [8, 32], strides = [1, 1]} : vector<8x128xf32> to vector<8x32xf32>
    %120 = arith.mulf %117, %51 : vector<8x32xf32>
    %121 = arith.mulf %116, %118 : vector<8x32xf32>
    %122 = arith.addf %120, %121 : vector<8x32xf32>
    %123 = math.tanh %122 : vector<8x32xf32>
    %124 = arith.mulf %119, %123 : vector<8x32xf32>
    %125 = arith.mulf %60, %6 : vector<8x32xf32>
    %126 = arith.subf %124, %125 : vector<8x32xf32>
    %127 = arith.subf %126, %6 : vector<8x32xf32>
    %cst_39 = arith.constant 0.000000e+00 : f32
    %128 = vector.broadcast %cst_39 : f32 to vector<8x32xf32>
    %129 = arith.cmpf ogt, %127, %128 : vector<8x32xf32>
    %130 = arith.extui %129 : vector<8x32xi1> to vector<8x32xi32>
    %131 = arith.sitofp %130 : vector<8x32xi32> to vector<8x32xf32>
    %cst_40 = arith.constant dense<0.000000e+00> : vector<32xf32>
    %132 = vector.multi_reduction <add>, %131, %cst_40 [0] : vector<8x32xf32> to vector<32xf32>
    %133 = vector.shape_cast %132 : vector<32xf32> to vector<1x32xf32>
    %cst_41 = arith.constant 8.000000e+00 : f32
    %134 = vector.broadcast %cst_41 : f32 to vector<1x32xf32>
    %135 = arith.divf %133, %134 : vector<1x32xf32>
    %136 = arith.mulf %135, %135 : vector<1x32xf32>
    %137 = arith.subf %135, %136 : vector<1x32xf32>
    %cst_42 = arith.constant 9.99999974E-6 : f32
    %138 = vector.broadcast %cst_42 : f32 to vector<1x32xf32>
    %139 = arith.addf %137, %138 : vector<1x32xf32>
    %140 = math.rsqrt %139 : vector<1x32xf32>
    %141 = arith.mulf %3, %140 : vector<1x32xf32>
    %142 = arith.mulf %135, %141 : vector<1x32xf32>
    %143 = arith.subf %4, %142 : vector<1x32xf32>
    %144 = vector.broadcast %141 : vector<1x32xf32> to vector<8x32xf32>
    %145 = arith.mulf %131, %144 : vector<8x32xf32>
    %146 = vector.broadcast %143 : vector<1x32xf32> to vector<8x32xf32>
    %147 = arith.addf %145, %146 : vector<8x32xf32>
    %148 = arith.truncf %147 : vector<8x32xf32> to vector<8x32xbf16>
    %cst_43 = arith.constant dense<0.000000e+00> : vector<8x128xf32>
    %149 = tpu.matmul %148, %1, %cst_43 {dimension_numbers = #tpu.dot_dimension_numbers<[1], [0], [0], [1], [0, 0, 1, 1], [], []>} : vector<8x32xbf16>, vector<32x128xbf16>, vector<8x128xf32> -> vector<8x128xf32>
    %150 = arith.truncf %99 : vector<8x32xf32> to vector<8x32xbf16>
    %cst_44 = arith.constant dense<0.000000e+00> : vector<8x128xf32>
    %151 = tpu.matmul %150, %2, %cst_44 {dimension_numbers = #tpu.dot_dimension_numbers<[1], [0], [0], [1], [0, 0, 1, 1], [], []>} : vector<8x32xbf16>, vector<32x128xbf16>, vector<8x128xf32> -> vector<8x128xf32>
    %152 = arith.addf %149, %151 : vector<8x128xf32>
    %153 = arith.addf %152, %11 : vector<8x128xf32>
    %154 = arith.negf %153 : vector<8x128xf32>
    %155 = math.exp %154 : vector<8x128xf32>
    %cst_45 = arith.constant 1.000000e+00 : f32
    %156 = vector.broadcast %cst_45 : f32 to vector<8x128xf32>
    %157 = arith.addf %156, %155 : vector<8x128xf32>
    %158 = arith.divf %156, %157 : vector<8x128xf32>
    %159 = math.tanh %153 : vector<8x128xf32>
    %160 = vector.extract_strided_slice %158 {offsets = [0, 0], sizes = [8, 32], strides = [1, 1]} : vector<8x128xf32> to vector<8x32xf32>
    %161 = vector.extract_strided_slice %158 {offsets = [0, 32], sizes = [8, 32], strides = [1, 1]} : vector<8x128xf32> to vector<8x32xf32>
    %162 = vector.extract_strided_slice %159 {offsets = [0, 64], sizes = [8, 32], strides = [1, 1]} : vector<8x128xf32> to vector<8x32xf32>
    %163 = vector.extract_strided_slice %158 {offsets = [0, 96], sizes = [8, 32], strides = [1, 1]} : vector<8x128xf32> to vector<8x32xf32>
    %164 = arith.mulf %161, %95 : vector<8x32xf32>
    %165 = arith.mulf %160, %162 : vector<8x32xf32>
    %166 = arith.addf %164, %165 : vector<8x32xf32>
    %167 = math.tanh %166 : vector<8x32xf32>
    %168 = arith.mulf %163, %167 : vector<8x32xf32>
    %169 = arith.mulf %104, %8 : vector<8x32xf32>
    %170 = arith.subf %168, %169 : vector<8x32xf32>
    %171 = arith.subf %170, %8 : vector<8x32xf32>
    %cst_46 = arith.constant 0.000000e+00 : f32
    %172 = vector.broadcast %cst_46 : f32 to vector<8x32xf32>
    %173 = arith.cmpf ogt, %171, %172 : vector<8x32xf32>
    %174 = arith.extui %173 : vector<8x32xi1> to vector<8x32xi32>
    %175 = arith.sitofp %174 : vector<8x32xi32> to vector<8x32xf32>
    %176 = arith.addf %105, %170 : vector<8x32xf32>
    %177 = vector.extract_strided_slice %17 {offsets = [16, 0], sizes = [8, 128], strides = [1, 1]} : vector<64x128xf32> to vector<8x128xf32>
    %178 = arith.truncf %126 : vector<8x32xf32> to vector<8x32xbf16>
    %cst_47 = arith.constant dense<0.000000e+00> : vector<8x128xf32>
    %179 = tpu.matmul %178, %0, %cst_47 {dimension_numbers = #tpu.dot_dimension_numbers<[1], [0], [0], [1], [0, 0, 1, 1], [], []>} : vector<8x32xbf16>, vector<32x128xbf16>, vector<8x128xf32> -> vector<8x128xf32>
    %180 = arith.addf %177, %179 : vector<8x128xf32>
    %181 = arith.negf %180 : vector<8x128xf32>
    %182 = math.exp %181 : vector<8x128xf32>
    %cst_48 = arith.constant 1.000000e+00 : f32
    %183 = vector.broadcast %cst_48 : f32 to vector<8x128xf32>
    %184 = arith.addf %183, %182 : vector<8x128xf32>
    %185 = arith.divf %183, %184 : vector<8x128xf32>
    %186 = math.tanh %180 : vector<8x128xf32>
    %187 = vector.extract_strided_slice %185 {offsets = [0, 0], sizes = [8, 32], strides = [1, 1]} : vector<8x128xf32> to vector<8x32xf32>
    %188 = vector.extract_strided_slice %185 {offsets = [0, 32], sizes = [8, 32], strides = [1, 1]} : vector<8x128xf32> to vector<8x32xf32>
    %189 = vector.extract_strided_slice %186 {offsets = [0, 64], sizes = [8, 32], strides = [1, 1]} : vector<8x128xf32> to vector<8x32xf32>
    %190 = vector.extract_strided_slice %185 {offsets = [0, 96], sizes = [8, 32], strides = [1, 1]} : vector<8x128xf32> to vector<8x32xf32>
    %191 = arith.mulf %188, %122 : vector<8x32xf32>
    %192 = arith.mulf %187, %189 : vector<8x32xf32>
    %193 = arith.addf %191, %192 : vector<8x32xf32>
    %194 = math.tanh %193 : vector<8x32xf32>
    %195 = arith.mulf %190, %194 : vector<8x32xf32>
    %196 = arith.mulf %131, %6 : vector<8x32xf32>
    %197 = arith.subf %195, %196 : vector<8x32xf32>
    %198 = arith.subf %197, %6 : vector<8x32xf32>
    %cst_49 = arith.constant 0.000000e+00 : f32
    %199 = vector.broadcast %cst_49 : f32 to vector<8x32xf32>
    %200 = arith.cmpf ogt, %198, %199 : vector<8x32xf32>
    %201 = arith.extui %200 : vector<8x32xi1> to vector<8x32xi32>
    %202 = arith.sitofp %201 : vector<8x32xi32> to vector<8x32xf32>
    %cst_50 = arith.constant dense<0.000000e+00> : vector<32xf32>
    %203 = vector.multi_reduction <add>, %202, %cst_50 [0] : vector<8x32xf32> to vector<32xf32>
    %204 = vector.shape_cast %203 : vector<32xf32> to vector<1x32xf32>
    %cst_51 = arith.constant 8.000000e+00 : f32
    %205 = vector.broadcast %cst_51 : f32 to vector<1x32xf32>
    %206 = arith.divf %204, %205 : vector<1x32xf32>
    %207 = arith.mulf %206, %206 : vector<1x32xf32>
    %208 = arith.subf %206, %207 : vector<1x32xf32>
    %cst_52 = arith.constant 9.99999974E-6 : f32
    %209 = vector.broadcast %cst_52 : f32 to vector<1x32xf32>
    %210 = arith.addf %208, %209 : vector<1x32xf32>
    %211 = math.rsqrt %210 : vector<1x32xf32>
    %212 = arith.mulf %3, %211 : vector<1x32xf32>
    %213 = arith.mulf %206, %212 : vector<1x32xf32>
    %214 = arith.subf %4, %213 : vector<1x32xf32>
    %215 = vector.broadcast %212 : vector<1x32xf32> to vector<8x32xf32>
    %216 = arith.mulf %202, %215 : vector<8x32xf32>
    %217 = vector.broadcast %214 : vector<1x32xf32> to vector<8x32xf32>
    %218 = arith.addf %216, %217 : vector<8x32xf32>
    %219 = arith.truncf %218 : vector<8x32xf32> to vector<8x32xbf16>
    %cst_53 = arith.constant dense<0.000000e+00> : vector<8x128xf32>
    %220 = tpu.matmul %219, %1, %cst_53 {dimension_numbers = #tpu.dot_dimension_numbers<[1], [0], [0], [1], [0, 0, 1, 1], [], []>} : vector<8x32xbf16>, vector<32x128xbf16>, vector<8x128xf32> -> vector<8x128xf32>
    %221 = arith.truncf %170 : vector<8x32xf32> to vector<8x32xbf16>
    %cst_54 = arith.constant dense<0.000000e+00> : vector<8x128xf32>
    %222 = tpu.matmul %221, %2, %cst_54 {dimension_numbers = #tpu.dot_dimension_numbers<[1], [0], [0], [1], [0, 0, 1, 1], [], []>} : vector<8x32xbf16>, vector<32x128xbf16>, vector<8x128xf32> -> vector<8x128xf32>
    %223 = arith.addf %220, %222 : vector<8x128xf32>
    %224 = arith.addf %223, %11 : vector<8x128xf32>
    %225 = arith.negf %224 : vector<8x128xf32>
    %226 = math.exp %225 : vector<8x128xf32>
    %cst_55 = arith.constant 1.000000e+00 : f32
    %227 = vector.broadcast %cst_55 : f32 to vector<8x128xf32>
    %228 = arith.addf %227, %226 : vector<8x128xf32>
    %229 = arith.divf %227, %228 : vector<8x128xf32>
    %230 = math.tanh %224 : vector<8x128xf32>
    %231 = vector.extract_strided_slice %229 {offsets = [0, 0], sizes = [8, 32], strides = [1, 1]} : vector<8x128xf32> to vector<8x32xf32>
    %232 = vector.extract_strided_slice %229 {offsets = [0, 32], sizes = [8, 32], strides = [1, 1]} : vector<8x128xf32> to vector<8x32xf32>
    %233 = vector.extract_strided_slice %230 {offsets = [0, 64], sizes = [8, 32], strides = [1, 1]} : vector<8x128xf32> to vector<8x32xf32>
    %234 = vector.extract_strided_slice %229 {offsets = [0, 96], sizes = [8, 32], strides = [1, 1]} : vector<8x128xf32> to vector<8x32xf32>
    %235 = arith.mulf %232, %166 : vector<8x32xf32>
    %236 = arith.mulf %231, %233 : vector<8x32xf32>
    %237 = arith.addf %235, %236 : vector<8x32xf32>
    %238 = math.tanh %237 : vector<8x32xf32>
    %239 = arith.mulf %234, %238 : vector<8x32xf32>
    %240 = arith.mulf %175, %8 : vector<8x32xf32>
    %241 = arith.subf %239, %240 : vector<8x32xf32>
    %242 = arith.subf %241, %8 : vector<8x32xf32>
    %cst_56 = arith.constant 0.000000e+00 : f32
    %243 = vector.broadcast %cst_56 : f32 to vector<8x32xf32>
    %244 = arith.cmpf ogt, %242, %243 : vector<8x32xf32>
    %245 = arith.extui %244 : vector<8x32xi1> to vector<8x32xi32>
    %246 = arith.sitofp %245 : vector<8x32xi32> to vector<8x32xf32>
    %247 = arith.addf %176, %241 : vector<8x32xf32>
    %248 = vector.extract_strided_slice %17 {offsets = [24, 0], sizes = [8, 128], strides = [1, 1]} : vector<64x128xf32> to vector<8x128xf32>
    %249 = arith.truncf %197 : vector<8x32xf32> to vector<8x32xbf16>
    %cst_57 = arith.constant dense<0.000000e+00> : vector<8x128xf32>
    %250 = tpu.matmul %249, %0, %cst_57 {dimension_numbers = #tpu.dot_dimension_numbers<[1], [0], [0], [1], [0, 0, 1, 1], [], []>} : vector<8x32xbf16>, vector<32x128xbf16>, vector<8x128xf32> -> vector<8x128xf32>
    %251 = arith.addf %248, %250 : vector<8x128xf32>
    %252 = arith.negf %251 : vector<8x128xf32>
    %253 = math.exp %252 : vector<8x128xf32>
    %cst_58 = arith.constant 1.000000e+00 : f32
    %254 = vector.broadcast %cst_58 : f32 to vector<8x128xf32>
    %255 = arith.addf %254, %253 : vector<8x128xf32>
    %256 = arith.divf %254, %255 : vector<8x128xf32>
    %257 = math.tanh %251 : vector<8x128xf32>
    %258 = vector.extract_strided_slice %256 {offsets = [0, 0], sizes = [8, 32], strides = [1, 1]} : vector<8x128xf32> to vector<8x32xf32>
    %259 = vector.extract_strided_slice %256 {offsets = [0, 32], sizes = [8, 32], strides = [1, 1]} : vector<8x128xf32> to vector<8x32xf32>
    %260 = vector.extract_strided_slice %257 {offsets = [0, 64], sizes = [8, 32], strides = [1, 1]} : vector<8x128xf32> to vector<8x32xf32>
    %261 = vector.extract_strided_slice %256 {offsets = [0, 96], sizes = [8, 32], strides = [1, 1]} : vector<8x128xf32> to vector<8x32xf32>
    %262 = arith.mulf %259, %193 : vector<8x32xf32>
    %263 = arith.mulf %258, %260 : vector<8x32xf32>
    %264 = arith.addf %262, %263 : vector<8x32xf32>
    %265 = math.tanh %264 : vector<8x32xf32>
    %266 = arith.mulf %261, %265 : vector<8x32xf32>
    %267 = arith.mulf %202, %6 : vector<8x32xf32>
    %268 = arith.subf %266, %267 : vector<8x32xf32>
    %269 = arith.subf %268, %6 : vector<8x32xf32>
    %cst_59 = arith.constant 0.000000e+00 : f32
    %270 = vector.broadcast %cst_59 : f32 to vector<8x32xf32>
    %271 = arith.cmpf ogt, %269, %270 : vector<8x32xf32>
    %272 = arith.extui %271 : vector<8x32xi1> to vector<8x32xi32>
    %273 = arith.sitofp %272 : vector<8x32xi32> to vector<8x32xf32>
    %cst_60 = arith.constant dense<0.000000e+00> : vector<32xf32>
    %274 = vector.multi_reduction <add>, %273, %cst_60 [0] : vector<8x32xf32> to vector<32xf32>
    %275 = vector.shape_cast %274 : vector<32xf32> to vector<1x32xf32>
    %cst_61 = arith.constant 8.000000e+00 : f32
    %276 = vector.broadcast %cst_61 : f32 to vector<1x32xf32>
    %277 = arith.divf %275, %276 : vector<1x32xf32>
    %278 = arith.mulf %277, %277 : vector<1x32xf32>
    %279 = arith.subf %277, %278 : vector<1x32xf32>
    %cst_62 = arith.constant 9.99999974E-6 : f32
    %280 = vector.broadcast %cst_62 : f32 to vector<1x32xf32>
    %281 = arith.addf %279, %280 : vector<1x32xf32>
    %282 = math.rsqrt %281 : vector<1x32xf32>
    %283 = arith.mulf %3, %282 : vector<1x32xf32>
    %284 = arith.mulf %277, %283 : vector<1x32xf32>
    %285 = arith.subf %4, %284 : vector<1x32xf32>
    %286 = vector.broadcast %283 : vector<1x32xf32> to vector<8x32xf32>
    %287 = arith.mulf %273, %286 : vector<8x32xf32>
    %288 = vector.broadcast %285 : vector<1x32xf32> to vector<8x32xf32>
    %289 = arith.addf %287, %288 : vector<8x32xf32>
    %290 = arith.truncf %289 : vector<8x32xf32> to vector<8x32xbf16>
    %cst_63 = arith.constant dense<0.000000e+00> : vector<8x128xf32>
    %291 = tpu.matmul %290, %1, %cst_63 {dimension_numbers = #tpu.dot_dimension_numbers<[1], [0], [0], [1], [0, 0, 1, 1], [], []>} : vector<8x32xbf16>, vector<32x128xbf16>, vector<8x128xf32> -> vector<8x128xf32>
    %292 = arith.truncf %241 : vector<8x32xf32> to vector<8x32xbf16>
    %cst_64 = arith.constant dense<0.000000e+00> : vector<8x128xf32>
    %293 = tpu.matmul %292, %2, %cst_64 {dimension_numbers = #tpu.dot_dimension_numbers<[1], [0], [0], [1], [0, 0, 1, 1], [], []>} : vector<8x32xbf16>, vector<32x128xbf16>, vector<8x128xf32> -> vector<8x128xf32>
    %294 = arith.addf %291, %293 : vector<8x128xf32>
    %295 = arith.addf %294, %11 : vector<8x128xf32>
    %296 = arith.negf %295 : vector<8x128xf32>
    %297 = math.exp %296 : vector<8x128xf32>
    %cst_65 = arith.constant 1.000000e+00 : f32
    %298 = vector.broadcast %cst_65 : f32 to vector<8x128xf32>
    %299 = arith.addf %298, %297 : vector<8x128xf32>
    %300 = arith.divf %298, %299 : vector<8x128xf32>
    %301 = math.tanh %295 : vector<8x128xf32>
    %302 = vector.extract_strided_slice %300 {offsets = [0, 0], sizes = [8, 32], strides = [1, 1]} : vector<8x128xf32> to vector<8x32xf32>
    %303 = vector.extract_strided_slice %300 {offsets = [0, 32], sizes = [8, 32], strides = [1, 1]} : vector<8x128xf32> to vector<8x32xf32>
    %304 = vector.extract_strided_slice %301 {offsets = [0, 64], sizes = [8, 32], strides = [1, 1]} : vector<8x128xf32> to vector<8x32xf32>
    %305 = vector.extract_strided_slice %300 {offsets = [0, 96], sizes = [8, 32], strides = [1, 1]} : vector<8x128xf32> to vector<8x32xf32>
    %306 = arith.mulf %303, %237 : vector<8x32xf32>
    %307 = arith.mulf %302, %304 : vector<8x32xf32>
    %308 = arith.addf %306, %307 : vector<8x32xf32>
    %309 = math.tanh %308 : vector<8x32xf32>
    %310 = arith.mulf %305, %309 : vector<8x32xf32>
    %311 = arith.mulf %246, %8 : vector<8x32xf32>
    %312 = arith.subf %310, %311 : vector<8x32xf32>
    %313 = arith.subf %312, %8 : vector<8x32xf32>
    %cst_66 = arith.constant 0.000000e+00 : f32
    %314 = vector.broadcast %cst_66 : f32 to vector<8x32xf32>
    %315 = arith.cmpf ogt, %313, %314 : vector<8x32xf32>
    %316 = arith.extui %315 : vector<8x32xi1> to vector<8x32xi32>
    %317 = arith.sitofp %316 : vector<8x32xi32> to vector<8x32xf32>
    %318 = arith.addf %247, %312 : vector<8x32xf32>
    %319 = vector.extract_strided_slice %17 {offsets = [32, 0], sizes = [8, 128], strides = [1, 1]} : vector<64x128xf32> to vector<8x128xf32>
    %320 = arith.truncf %268 : vector<8x32xf32> to vector<8x32xbf16>
    %cst_67 = arith.constant dense<0.000000e+00> : vector<8x128xf32>
    %321 = tpu.matmul %320, %0, %cst_67 {dimension_numbers = #tpu.dot_dimension_numbers<[1], [0], [0], [1], [0, 0, 1, 1], [], []>} : vector<8x32xbf16>, vector<32x128xbf16>, vector<8x128xf32> -> vector<8x128xf32>
    %322 = arith.addf %319, %321 : vector<8x128xf32>
    %323 = arith.negf %322 : vector<8x128xf32>
    %324 = math.exp %323 : vector<8x128xf32>
    %cst_68 = arith.constant 1.000000e+00 : f32
    %325 = vector.broadcast %cst_68 : f32 to vector<8x128xf32>
    %326 = arith.addf %325, %324 : vector<8x128xf32>
    %327 = arith.divf %325, %326 : vector<8x128xf32>
    %328 = math.tanh %322 : vector<8x128xf32>
    %329 = vector.extract_strided_slice %327 {offsets = [0, 0], sizes = [8, 32], strides = [1, 1]} : vector<8x128xf32> to vector<8x32xf32>
    %330 = vector.extract_strided_slice %327 {offsets = [0, 32], sizes = [8, 32], strides = [1, 1]} : vector<8x128xf32> to vector<8x32xf32>
    %331 = vector.extract_strided_slice %328 {offsets = [0, 64], sizes = [8, 32], strides = [1, 1]} : vector<8x128xf32> to vector<8x32xf32>
    %332 = vector.extract_strided_slice %327 {offsets = [0, 96], sizes = [8, 32], strides = [1, 1]} : vector<8x128xf32> to vector<8x32xf32>
    %333 = arith.mulf %330, %264 : vector<8x32xf32>
    %334 = arith.mulf %329, %331 : vector<8x32xf32>
    %335 = arith.addf %333, %334 : vector<8x32xf32>
    %336 = math.tanh %335 : vector<8x32xf32>
    %337 = arith.mulf %332, %336 : vector<8x32xf32>
    %338 = arith.mulf %273, %6 : vector<8x32xf32>
    %339 = arith.subf %337, %338 : vector<8x32xf32>
    %340 = arith.subf %339, %6 : vector<8x32xf32>
    %cst_69 = arith.constant 0.000000e+00 : f32
    %341 = vector.broadcast %cst_69 : f32 to vector<8x32xf32>
    %342 = arith.cmpf ogt, %340, %341 : vector<8x32xf32>
    %343 = arith.extui %342 : vector<8x32xi1> to vector<8x32xi32>
    %344 = arith.sitofp %343 : vector<8x32xi32> to vector<8x32xf32>
    %cst_70 = arith.constant dense<0.000000e+00> : vector<32xf32>
    %345 = vector.multi_reduction <add>, %344, %cst_70 [0] : vector<8x32xf32> to vector<32xf32>
    %346 = vector.shape_cast %345 : vector<32xf32> to vector<1x32xf32>
    %cst_71 = arith.constant 8.000000e+00 : f32
    %347 = vector.broadcast %cst_71 : f32 to vector<1x32xf32>
    %348 = arith.divf %346, %347 : vector<1x32xf32>
    %349 = arith.mulf %348, %348 : vector<1x32xf32>
    %350 = arith.subf %348, %349 : vector<1x32xf32>
    %cst_72 = arith.constant 9.99999974E-6 : f32
    %351 = vector.broadcast %cst_72 : f32 to vector<1x32xf32>
    %352 = arith.addf %350, %351 : vector<1x32xf32>
    %353 = math.rsqrt %352 : vector<1x32xf32>
    %354 = arith.mulf %3, %353 : vector<1x32xf32>
    %355 = arith.mulf %348, %354 : vector<1x32xf32>
    %356 = arith.subf %4, %355 : vector<1x32xf32>
    %357 = vector.broadcast %354 : vector<1x32xf32> to vector<8x32xf32>
    %358 = arith.mulf %344, %357 : vector<8x32xf32>
    %359 = vector.broadcast %356 : vector<1x32xf32> to vector<8x32xf32>
    %360 = arith.addf %358, %359 : vector<8x32xf32>
    %361 = arith.truncf %360 : vector<8x32xf32> to vector<8x32xbf16>
    %cst_73 = arith.constant dense<0.000000e+00> : vector<8x128xf32>
    %362 = tpu.matmul %361, %1, %cst_73 {dimension_numbers = #tpu.dot_dimension_numbers<[1], [0], [0], [1], [0, 0, 1, 1], [], []>} : vector<8x32xbf16>, vector<32x128xbf16>, vector<8x128xf32> -> vector<8x128xf32>
    %363 = arith.truncf %312 : vector<8x32xf32> to vector<8x32xbf16>
    %cst_74 = arith.constant dense<0.000000e+00> : vector<8x128xf32>
    %364 = tpu.matmul %363, %2, %cst_74 {dimension_numbers = #tpu.dot_dimension_numbers<[1], [0], [0], [1], [0, 0, 1, 1], [], []>} : vector<8x32xbf16>, vector<32x128xbf16>, vector<8x128xf32> -> vector<8x128xf32>
    %365 = arith.addf %362, %364 : vector<8x128xf32>
    %366 = arith.addf %365, %11 : vector<8x128xf32>
    %367 = arith.negf %366 : vector<8x128xf32>
    %368 = math.exp %367 : vector<8x128xf32>
    %cst_75 = arith.constant 1.000000e+00 : f32
    %369 = vector.broadcast %cst_75 : f32 to vector<8x128xf32>
    %370 = arith.addf %369, %368 : vector<8x128xf32>
    %371 = arith.divf %369, %370 : vector<8x128xf32>
    %372 = math.tanh %366 : vector<8x128xf32>
    %373 = vector.extract_strided_slice %371 {offsets = [0, 0], sizes = [8, 32], strides = [1, 1]} : vector<8x128xf32> to vector<8x32xf32>
    %374 = vector.extract_strided_slice %371 {offsets = [0, 32], sizes = [8, 32], strides = [1, 1]} : vector<8x128xf32> to vector<8x32xf32>
    %375 = vector.extract_strided_slice %372 {offsets = [0, 64], sizes = [8, 32], strides = [1, 1]} : vector<8x128xf32> to vector<8x32xf32>
    %376 = vector.extract_strided_slice %371 {offsets = [0, 96], sizes = [8, 32], strides = [1, 1]} : vector<8x128xf32> to vector<8x32xf32>
    %377 = arith.mulf %374, %308 : vector<8x32xf32>
    %378 = arith.mulf %373, %375 : vector<8x32xf32>
    %379 = arith.addf %377, %378 : vector<8x32xf32>
    %380 = math.tanh %379 : vector<8x32xf32>
    %381 = arith.mulf %376, %380 : vector<8x32xf32>
    %382 = arith.mulf %317, %8 : vector<8x32xf32>
    %383 = arith.subf %381, %382 : vector<8x32xf32>
    %384 = arith.subf %383, %8 : vector<8x32xf32>
    %cst_76 = arith.constant 0.000000e+00 : f32
    %385 = vector.broadcast %cst_76 : f32 to vector<8x32xf32>
    %386 = arith.cmpf ogt, %384, %385 : vector<8x32xf32>
    %387 = arith.extui %386 : vector<8x32xi1> to vector<8x32xi32>
    %388 = arith.sitofp %387 : vector<8x32xi32> to vector<8x32xf32>
    %389 = arith.addf %318, %383 : vector<8x32xf32>
    %390 = vector.extract_strided_slice %17 {offsets = [40, 0], sizes = [8, 128], strides = [1, 1]} : vector<64x128xf32> to vector<8x128xf32>
    %391 = arith.truncf %339 : vector<8x32xf32> to vector<8x32xbf16>
    %cst_77 = arith.constant dense<0.000000e+00> : vector<8x128xf32>
    %392 = tpu.matmul %391, %0, %cst_77 {dimension_numbers = #tpu.dot_dimension_numbers<[1], [0], [0], [1], [0, 0, 1, 1], [], []>} : vector<8x32xbf16>, vector<32x128xbf16>, vector<8x128xf32> -> vector<8x128xf32>
    %393 = arith.addf %390, %392 : vector<8x128xf32>
    %394 = arith.negf %393 : vector<8x128xf32>
    %395 = math.exp %394 : vector<8x128xf32>
    %cst_78 = arith.constant 1.000000e+00 : f32
    %396 = vector.broadcast %cst_78 : f32 to vector<8x128xf32>
    %397 = arith.addf %396, %395 : vector<8x128xf32>
    %398 = arith.divf %396, %397 : vector<8x128xf32>
    %399 = math.tanh %393 : vector<8x128xf32>
    %400 = vector.extract_strided_slice %398 {offsets = [0, 0], sizes = [8, 32], strides = [1, 1]} : vector<8x128xf32> to vector<8x32xf32>
    %401 = vector.extract_strided_slice %398 {offsets = [0, 32], sizes = [8, 32], strides = [1, 1]} : vector<8x128xf32> to vector<8x32xf32>
    %402 = vector.extract_strided_slice %399 {offsets = [0, 64], sizes = [8, 32], strides = [1, 1]} : vector<8x128xf32> to vector<8x32xf32>
    %403 = vector.extract_strided_slice %398 {offsets = [0, 96], sizes = [8, 32], strides = [1, 1]} : vector<8x128xf32> to vector<8x32xf32>
    %404 = arith.mulf %401, %335 : vector<8x32xf32>
    %405 = arith.mulf %400, %402 : vector<8x32xf32>
    %406 = arith.addf %404, %405 : vector<8x32xf32>
    %407 = math.tanh %406 : vector<8x32xf32>
    %408 = arith.mulf %403, %407 : vector<8x32xf32>
    %409 = arith.mulf %344, %6 : vector<8x32xf32>
    %410 = arith.subf %408, %409 : vector<8x32xf32>
    %411 = arith.subf %410, %6 : vector<8x32xf32>
    %cst_79 = arith.constant 0.000000e+00 : f32
    %412 = vector.broadcast %cst_79 : f32 to vector<8x32xf32>
    %413 = arith.cmpf ogt, %411, %412 : vector<8x32xf32>
    %414 = arith.extui %413 : vector<8x32xi1> to vector<8x32xi32>
    %415 = arith.sitofp %414 : vector<8x32xi32> to vector<8x32xf32>
    %cst_80 = arith.constant dense<0.000000e+00> : vector<32xf32>
    %416 = vector.multi_reduction <add>, %415, %cst_80 [0] : vector<8x32xf32> to vector<32xf32>
    %417 = vector.shape_cast %416 : vector<32xf32> to vector<1x32xf32>
    %cst_81 = arith.constant 8.000000e+00 : f32
    %418 = vector.broadcast %cst_81 : f32 to vector<1x32xf32>
    %419 = arith.divf %417, %418 : vector<1x32xf32>
    %420 = arith.mulf %419, %419 : vector<1x32xf32>
    %421 = arith.subf %419, %420 : vector<1x32xf32>
    %cst_82 = arith.constant 9.99999974E-6 : f32
    %422 = vector.broadcast %cst_82 : f32 to vector<1x32xf32>
    %423 = arith.addf %421, %422 : vector<1x32xf32>
    %424 = math.rsqrt %423 : vector<1x32xf32>
    %425 = arith.mulf %3, %424 : vector<1x32xf32>
    %426 = arith.mulf %419, %425 : vector<1x32xf32>
    %427 = arith.subf %4, %426 : vector<1x32xf32>
    %428 = vector.broadcast %425 : vector<1x32xf32> to vector<8x32xf32>
    %429 = arith.mulf %415, %428 : vector<8x32xf32>
    %430 = vector.broadcast %427 : vector<1x32xf32> to vector<8x32xf32>
    %431 = arith.addf %429, %430 : vector<8x32xf32>
    %432 = arith.truncf %431 : vector<8x32xf32> to vector<8x32xbf16>
    %cst_83 = arith.constant dense<0.000000e+00> : vector<8x128xf32>
    %433 = tpu.matmul %432, %1, %cst_83 {dimension_numbers = #tpu.dot_dimension_numbers<[1], [0], [0], [1], [0, 0, 1, 1], [], []>} : vector<8x32xbf16>, vector<32x128xbf16>, vector<8x128xf32> -> vector<8x128xf32>
    %434 = arith.truncf %383 : vector<8x32xf32> to vector<8x32xbf16>
    %cst_84 = arith.constant dense<0.000000e+00> : vector<8x128xf32>
    %435 = tpu.matmul %434, %2, %cst_84 {dimension_numbers = #tpu.dot_dimension_numbers<[1], [0], [0], [1], [0, 0, 1, 1], [], []>} : vector<8x32xbf16>, vector<32x128xbf16>, vector<8x128xf32> -> vector<8x128xf32>
    %436 = arith.addf %433, %435 : vector<8x128xf32>
    %437 = arith.addf %436, %11 : vector<8x128xf32>
    %438 = arith.negf %437 : vector<8x128xf32>
    %439 = math.exp %438 : vector<8x128xf32>
    %cst_85 = arith.constant 1.000000e+00 : f32
    %440 = vector.broadcast %cst_85 : f32 to vector<8x128xf32>
    %441 = arith.addf %440, %439 : vector<8x128xf32>
    %442 = arith.divf %440, %441 : vector<8x128xf32>
    %443 = math.tanh %437 : vector<8x128xf32>
    %444 = vector.extract_strided_slice %442 {offsets = [0, 0], sizes = [8, 32], strides = [1, 1]} : vector<8x128xf32> to vector<8x32xf32>
    %445 = vector.extract_strided_slice %442 {offsets = [0, 32], sizes = [8, 32], strides = [1, 1]} : vector<8x128xf32> to vector<8x32xf32>
    %446 = vector.extract_strided_slice %443 {offsets = [0, 64], sizes = [8, 32], strides = [1, 1]} : vector<8x128xf32> to vector<8x32xf32>
    %447 = vector.extract_strided_slice %442 {offsets = [0, 96], sizes = [8, 32], strides = [1, 1]} : vector<8x128xf32> to vector<8x32xf32>
    %448 = arith.mulf %445, %379 : vector<8x32xf32>
    %449 = arith.mulf %444, %446 : vector<8x32xf32>
    %450 = arith.addf %448, %449 : vector<8x32xf32>
    %451 = math.tanh %450 : vector<8x32xf32>
    %452 = arith.mulf %447, %451 : vector<8x32xf32>
    %453 = arith.mulf %388, %8 : vector<8x32xf32>
    %454 = arith.subf %452, %453 : vector<8x32xf32>
    %455 = arith.subf %454, %8 : vector<8x32xf32>
    %cst_86 = arith.constant 0.000000e+00 : f32
    %456 = vector.broadcast %cst_86 : f32 to vector<8x32xf32>
    %457 = arith.cmpf ogt, %455, %456 : vector<8x32xf32>
    %458 = arith.extui %457 : vector<8x32xi1> to vector<8x32xi32>
    %459 = arith.sitofp %458 : vector<8x32xi32> to vector<8x32xf32>
    %460 = arith.addf %389, %454 : vector<8x32xf32>
    %461 = vector.extract_strided_slice %17 {offsets = [48, 0], sizes = [8, 128], strides = [1, 1]} : vector<64x128xf32> to vector<8x128xf32>
    %462 = arith.truncf %410 : vector<8x32xf32> to vector<8x32xbf16>
    %cst_87 = arith.constant dense<0.000000e+00> : vector<8x128xf32>
    %463 = tpu.matmul %462, %0, %cst_87 {dimension_numbers = #tpu.dot_dimension_numbers<[1], [0], [0], [1], [0, 0, 1, 1], [], []>} : vector<8x32xbf16>, vector<32x128xbf16>, vector<8x128xf32> -> vector<8x128xf32>
    %464 = arith.addf %461, %463 : vector<8x128xf32>
    %465 = arith.negf %464 : vector<8x128xf32>
    %466 = math.exp %465 : vector<8x128xf32>
    %cst_88 = arith.constant 1.000000e+00 : f32
    %467 = vector.broadcast %cst_88 : f32 to vector<8x128xf32>
    %468 = arith.addf %467, %466 : vector<8x128xf32>
    %469 = arith.divf %467, %468 : vector<8x128xf32>
    %470 = math.tanh %464 : vector<8x128xf32>
    %471 = vector.extract_strided_slice %469 {offsets = [0, 0], sizes = [8, 32], strides = [1, 1]} : vector<8x128xf32> to vector<8x32xf32>
    %472 = vector.extract_strided_slice %469 {offsets = [0, 32], sizes = [8, 32], strides = [1, 1]} : vector<8x128xf32> to vector<8x32xf32>
    %473 = vector.extract_strided_slice %470 {offsets = [0, 64], sizes = [8, 32], strides = [1, 1]} : vector<8x128xf32> to vector<8x32xf32>
    %474 = vector.extract_strided_slice %469 {offsets = [0, 96], sizes = [8, 32], strides = [1, 1]} : vector<8x128xf32> to vector<8x32xf32>
    %475 = arith.mulf %472, %406 : vector<8x32xf32>
    %476 = arith.mulf %471, %473 : vector<8x32xf32>
    %477 = arith.addf %475, %476 : vector<8x32xf32>
    %478 = math.tanh %477 : vector<8x32xf32>
    %479 = arith.mulf %474, %478 : vector<8x32xf32>
    %480 = arith.mulf %415, %6 : vector<8x32xf32>
    %481 = arith.subf %479, %480 : vector<8x32xf32>
    %482 = arith.subf %481, %6 : vector<8x32xf32>
    %cst_89 = arith.constant 0.000000e+00 : f32
    %483 = vector.broadcast %cst_89 : f32 to vector<8x32xf32>
    %484 = arith.cmpf ogt, %482, %483 : vector<8x32xf32>
    %485 = arith.extui %484 : vector<8x32xi1> to vector<8x32xi32>
    %486 = arith.sitofp %485 : vector<8x32xi32> to vector<8x32xf32>
    %cst_90 = arith.constant dense<0.000000e+00> : vector<32xf32>
    %487 = vector.multi_reduction <add>, %486, %cst_90 [0] : vector<8x32xf32> to vector<32xf32>
    %488 = vector.shape_cast %487 : vector<32xf32> to vector<1x32xf32>
    %cst_91 = arith.constant 8.000000e+00 : f32
    %489 = vector.broadcast %cst_91 : f32 to vector<1x32xf32>
    %490 = arith.divf %488, %489 : vector<1x32xf32>
    %491 = arith.mulf %490, %490 : vector<1x32xf32>
    %492 = arith.subf %490, %491 : vector<1x32xf32>
    %cst_92 = arith.constant 9.99999974E-6 : f32
    %493 = vector.broadcast %cst_92 : f32 to vector<1x32xf32>
    %494 = arith.addf %492, %493 : vector<1x32xf32>
    %495 = math.rsqrt %494 : vector<1x32xf32>
    %496 = arith.mulf %3, %495 : vector<1x32xf32>
    %497 = arith.mulf %490, %496 : vector<1x32xf32>
    %498 = arith.subf %4, %497 : vector<1x32xf32>
    %499 = vector.broadcast %496 : vector<1x32xf32> to vector<8x32xf32>
    %500 = arith.mulf %486, %499 : vector<8x32xf32>
    %501 = vector.broadcast %498 : vector<1x32xf32> to vector<8x32xf32>
    %502 = arith.addf %500, %501 : vector<8x32xf32>
    %503 = arith.truncf %502 : vector<8x32xf32> to vector<8x32xbf16>
    %cst_93 = arith.constant dense<0.000000e+00> : vector<8x128xf32>
    %504 = tpu.matmul %503, %1, %cst_93 {dimension_numbers = #tpu.dot_dimension_numbers<[1], [0], [0], [1], [0, 0, 1, 1], [], []>} : vector<8x32xbf16>, vector<32x128xbf16>, vector<8x128xf32> -> vector<8x128xf32>
    %505 = arith.truncf %454 : vector<8x32xf32> to vector<8x32xbf16>
    %cst_94 = arith.constant dense<0.000000e+00> : vector<8x128xf32>
    %506 = tpu.matmul %505, %2, %cst_94 {dimension_numbers = #tpu.dot_dimension_numbers<[1], [0], [0], [1], [0, 0, 1, 1], [], []>} : vector<8x32xbf16>, vector<32x128xbf16>, vector<8x128xf32> -> vector<8x128xf32>
    %507 = arith.addf %504, %506 : vector<8x128xf32>
    %508 = arith.addf %507, %11 : vector<8x128xf32>
    %509 = arith.negf %508 : vector<8x128xf32>
    %510 = math.exp %509 : vector<8x128xf32>
    %cst_95 = arith.constant 1.000000e+00 : f32
    %511 = vector.broadcast %cst_95 : f32 to vector<8x128xf32>
    %512 = arith.addf %511, %510 : vector<8x128xf32>
    %513 = arith.divf %511, %512 : vector<8x128xf32>
    %514 = math.tanh %508 : vector<8x128xf32>
    %515 = vector.extract_strided_slice %513 {offsets = [0, 0], sizes = [8, 32], strides = [1, 1]} : vector<8x128xf32> to vector<8x32xf32>
    %516 = vector.extract_strided_slice %513 {offsets = [0, 32], sizes = [8, 32], strides = [1, 1]} : vector<8x128xf32> to vector<8x32xf32>
    %517 = vector.extract_strided_slice %514 {offsets = [0, 64], sizes = [8, 32], strides = [1, 1]} : vector<8x128xf32> to vector<8x32xf32>
    %518 = vector.extract_strided_slice %513 {offsets = [0, 96], sizes = [8, 32], strides = [1, 1]} : vector<8x128xf32> to vector<8x32xf32>
    %519 = arith.mulf %516, %450 : vector<8x32xf32>
    %520 = arith.mulf %515, %517 : vector<8x32xf32>
    %521 = arith.addf %519, %520 : vector<8x32xf32>
    %522 = math.tanh %521 : vector<8x32xf32>
    %523 = arith.mulf %518, %522 : vector<8x32xf32>
    %524 = arith.mulf %459, %8 : vector<8x32xf32>
    %525 = arith.subf %523, %524 : vector<8x32xf32>
    %526 = arith.subf %525, %8 : vector<8x32xf32>
    %cst_96 = arith.constant 0.000000e+00 : f32
    %527 = vector.broadcast %cst_96 : f32 to vector<8x32xf32>
    %528 = arith.cmpf ogt, %526, %527 : vector<8x32xf32>
    %529 = arith.extui %528 : vector<8x32xi1> to vector<8x32xi32>
    %530 = arith.sitofp %529 : vector<8x32xi32> to vector<8x32xf32>
    %531 = arith.addf %460, %525 : vector<8x32xf32>
    %532 = vector.extract_strided_slice %17 {offsets = [56, 0], sizes = [8, 128], strides = [1, 1]} : vector<64x128xf32> to vector<8x128xf32>
    %533 = arith.truncf %481 : vector<8x32xf32> to vector<8x32xbf16>
    %cst_97 = arith.constant dense<0.000000e+00> : vector<8x128xf32>
    %534 = tpu.matmul %533, %0, %cst_97 {dimension_numbers = #tpu.dot_dimension_numbers<[1], [0], [0], [1], [0, 0, 1, 1], [], []>} : vector<8x32xbf16>, vector<32x128xbf16>, vector<8x128xf32> -> vector<8x128xf32>
    %535 = arith.addf %532, %534 : vector<8x128xf32>
    %536 = arith.negf %535 : vector<8x128xf32>
    %537 = math.exp %536 : vector<8x128xf32>
    %cst_98 = arith.constant 1.000000e+00 : f32
    %538 = vector.broadcast %cst_98 : f32 to vector<8x128xf32>
    %539 = arith.addf %538, %537 : vector<8x128xf32>
    %540 = arith.divf %538, %539 : vector<8x128xf32>
    %541 = math.tanh %535 : vector<8x128xf32>
    %542 = vector.extract_strided_slice %540 {offsets = [0, 0], sizes = [8, 32], strides = [1, 1]} : vector<8x128xf32> to vector<8x32xf32>
    %543 = vector.extract_strided_slice %540 {offsets = [0, 32], sizes = [8, 32], strides = [1, 1]} : vector<8x128xf32> to vector<8x32xf32>
    %544 = vector.extract_strided_slice %541 {offsets = [0, 64], sizes = [8, 32], strides = [1, 1]} : vector<8x128xf32> to vector<8x32xf32>
    %545 = vector.extract_strided_slice %540 {offsets = [0, 96], sizes = [8, 32], strides = [1, 1]} : vector<8x128xf32> to vector<8x32xf32>
    %546 = arith.mulf %543, %477 : vector<8x32xf32>
    %547 = arith.mulf %542, %544 : vector<8x32xf32>
    %548 = arith.addf %546, %547 : vector<8x32xf32>
    %549 = math.tanh %548 : vector<8x32xf32>
    %550 = arith.mulf %545, %549 : vector<8x32xf32>
    %551 = arith.mulf %486, %6 : vector<8x32xf32>
    %552 = arith.subf %550, %551 : vector<8x32xf32>
    %553 = arith.subf %552, %6 : vector<8x32xf32>
    %cst_99 = arith.constant 0.000000e+00 : f32
    %554 = vector.broadcast %cst_99 : f32 to vector<8x32xf32>
    %555 = arith.cmpf ogt, %553, %554 : vector<8x32xf32>
    %556 = arith.extui %555 : vector<8x32xi1> to vector<8x32xi32>
    %557 = arith.sitofp %556 : vector<8x32xi32> to vector<8x32xf32>
    %cst_100 = arith.constant dense<0.000000e+00> : vector<32xf32>
    %558 = vector.multi_reduction <add>, %557, %cst_100 [0] : vector<8x32xf32> to vector<32xf32>
    %559 = vector.shape_cast %558 : vector<32xf32> to vector<1x32xf32>
    %cst_101 = arith.constant 8.000000e+00 : f32
    %560 = vector.broadcast %cst_101 : f32 to vector<1x32xf32>
    %561 = arith.divf %559, %560 : vector<1x32xf32>
    %562 = arith.mulf %561, %561 : vector<1x32xf32>
    %563 = arith.subf %561, %562 : vector<1x32xf32>
    %cst_102 = arith.constant 9.99999974E-6 : f32
    %564 = vector.broadcast %cst_102 : f32 to vector<1x32xf32>
    %565 = arith.addf %563, %564 : vector<1x32xf32>
    %566 = math.rsqrt %565 : vector<1x32xf32>
    %567 = arith.mulf %3, %566 : vector<1x32xf32>
    %568 = arith.mulf %561, %567 : vector<1x32xf32>
    %569 = arith.subf %4, %568 : vector<1x32xf32>
    %570 = vector.broadcast %567 : vector<1x32xf32> to vector<8x32xf32>
    %571 = arith.mulf %557, %570 : vector<8x32xf32>
    %572 = vector.broadcast %569 : vector<1x32xf32> to vector<8x32xf32>
    %573 = arith.addf %571, %572 : vector<8x32xf32>
    %574 = arith.truncf %573 : vector<8x32xf32> to vector<8x32xbf16>
    %cst_103 = arith.constant dense<0.000000e+00> : vector<8x128xf32>
    %575 = tpu.matmul %574, %1, %cst_103 {dimension_numbers = #tpu.dot_dimension_numbers<[1], [0], [0], [1], [0, 0, 1, 1], [], []>} : vector<8x32xbf16>, vector<32x128xbf16>, vector<8x128xf32> -> vector<8x128xf32>
    %576 = arith.truncf %525 : vector<8x32xf32> to vector<8x32xbf16>
    %cst_104 = arith.constant dense<0.000000e+00> : vector<8x128xf32>
    %577 = tpu.matmul %576, %2, %cst_104 {dimension_numbers = #tpu.dot_dimension_numbers<[1], [0], [0], [1], [0, 0, 1, 1], [], []>} : vector<8x32xbf16>, vector<32x128xbf16>, vector<8x128xf32> -> vector<8x128xf32>
    %578 = arith.addf %575, %577 : vector<8x128xf32>
    %579 = arith.addf %578, %11 : vector<8x128xf32>
    %580 = arith.negf %579 : vector<8x128xf32>
    %581 = math.exp %580 : vector<8x128xf32>
    %cst_105 = arith.constant 1.000000e+00 : f32
    %582 = vector.broadcast %cst_105 : f32 to vector<8x128xf32>
    %583 = arith.addf %582, %581 : vector<8x128xf32>
    %584 = arith.divf %582, %583 : vector<8x128xf32>
    %585 = math.tanh %579 : vector<8x128xf32>
    %586 = vector.extract_strided_slice %584 {offsets = [0, 0], sizes = [8, 32], strides = [1, 1]} : vector<8x128xf32> to vector<8x32xf32>
    %587 = vector.extract_strided_slice %584 {offsets = [0, 32], sizes = [8, 32], strides = [1, 1]} : vector<8x128xf32> to vector<8x32xf32>
    %588 = vector.extract_strided_slice %585 {offsets = [0, 64], sizes = [8, 32], strides = [1, 1]} : vector<8x128xf32> to vector<8x32xf32>
    %589 = vector.extract_strided_slice %584 {offsets = [0, 96], sizes = [8, 32], strides = [1, 1]} : vector<8x128xf32> to vector<8x32xf32>
    %590 = arith.mulf %587, %521 : vector<8x32xf32>
    %591 = arith.mulf %586, %588 : vector<8x32xf32>
    %592 = arith.addf %590, %591 : vector<8x32xf32>
    %593 = math.tanh %592 : vector<8x32xf32>
    %594 = arith.mulf %589, %593 : vector<8x32xf32>
    %595 = arith.mulf %530, %8 : vector<8x32xf32>
    %596 = arith.subf %594, %595 : vector<8x32xf32>
    %597 = arith.addf %531, %596 : vector<8x32xf32>
    %598 = arith.truncf %597 : vector<8x32xf32> to vector<8x32xbf16>
    %c0_106 = arith.constant 0 : index
    %c0_107 = arith.constant 0 : index
    %599 = vector.load %arg9[%c0_106, %c0_107] : memref<32x8xbf16, #tpu.memory_space<vmem>>, vector<32x8xbf16>
    %cst_108 = arith.constant dense<0.000000e+00> : vector<8x8xf32>
    %600 = tpu.matmul %598, %599, %cst_108 {dimension_numbers = #tpu.dot_dimension_numbers<[1], [0], [0], [1], [0, 0, 1, 1], [], []>} : vector<8x32xbf16>, vector<32x8xbf16>, vector<8x8xf32> -> vector<8x8xf32>
    %c0_109 = arith.constant 0 : index
    %c0_110 = arith.constant 0 : index
    %601 = vector.load %arg10[%c0_109, %c0_110] : memref<1x8xf32, #tpu.memory_space<vmem>>, vector<1x8xf32>
    %602 = vector.broadcast %601 : vector<1x8xf32> to vector<8x8xf32>
    %603 = arith.addf %600, %602 : vector<8x8xf32>
    %c0_111 = arith.constant 0 : index
    %c0_112 = arith.constant 0 : index
    %604 = vector.load %arg12[%c0_111, %c0_112] : memref<8x8xf32, #tpu.memory_space<vmem>>, vector<8x8xf32>
    tpu.vector_store %arg12[%c0_111, %c0_112], %603 {strides = array<i32>} : memref<8x8xf32, #tpu.memory_space<vmem>>, vector<8x8xf32>,
    return
  }
}

</mosaic_0001>

<bundles_post_ra>
// kernel: tpu_custom_call.1
= control target key start
LH: loop header
LB: loop body
LE: loop exit
PB: predicated region body
PF: predicated region fallthrough
CT: control target
= control target key end

     0   :  { %17 = vsyncpa [#allocation4], 0  ;;  %s3910_s0 = inlined_call_operand.vmem [shape: bf16[64,14], index: 0, kind: input, shape index: {}]   ;;  %s3911_s1 = inlined_call_operand.vmem [shape: bf16[14,128], index: 1, kind: input, shape index: {}]   ;;  %s3912_s2 = inlined_call_operand.vmem [shape: bf16[32,128], index: 2, kind: input, shape index: {}]   ;;  %s3913_s3 = inlined_call_operand.vmem [shape: f32[1,128], index: 3, kind: input, shape index: {}]   ;;  %s3914_s4 = inlined_call_operand.vmem [shape: bf16[32,128], index: 4, kind: input, shape index: {}]   ;;  %s3915_s5 = inlined_call_operand.vmem [shape: bf16[32,128], index: 5, kind: input, shape index: {}]   ;;  %s3916_s6 = inlined_call_operand.vmem [shape: f32[1,128], index: 6, kind: input, shape index: {}]   ;;  %s3917_s7 = inlined_call_operand.vmem [shape: f32[1,32], index: 7, kind: input, shape index: {}]   ;;  %s3918_s8 = inlined_call_operand.vmem [shape: f32[1,32], index: 8, kind: input, shape index: {}]   ;;  %s3919_s9 = inlined_call_operand.vmem [shape: bf16[32,8], index: 9, kind: input, shape index: {}]   ;;  %s3920_s10 = inlined_call_operand.vmem [shape: f32[1,8], index: 10, kind: input, shape index: {}]   ;;  %s3921_s11 = inlined_call_operand.vmem [shape: f32[2], index: 11, kind: input, shape index: {}]   ;;  %s3922_s12 = inlined_call_operand.hbm [shape: f32[8,8], index: 12, kind: output, shape index: {}]  }
   0x1   :  { %18 = vsyncpa [#allocation3], 0  ;;  %s47_s23 = sshll.u32 %s3921_s11, 4  ;;  %s48_s23 = int_to_ptr.vmem [resolvable:$true] %s47_s23 }
   0x2   :  { %s3052_s24 = scalar_lea.vmem %s48_s23, 16  ;;  %p3057_p1 = scmp.lt.s32.totalorder %s48_s23, %s48_s23 }
   0x3   :  { %p3053_p0 = scmp.ne.s32.totalorder %s48_s23, %s3052_s24  ;;  %p3058_p2 = scmp.lt.s32.totalorder %s3052_s24, %s3052_s24 }
   0x5   :  { %p3059_p3 = por %p3058_p2, %p3057_p1 }
   0x7   :  { %p3060_p4 = pnand %p3059_p3, %p3053_p0 }
   0x9   :  { %3063 = shalt.err (!%p3060_p4)
}
   0xa   :  { %s3090_s25 = smov [#allocation2]  }
   0xb   :  { %50 = dma.vmem_to_smem %s48_s23, 16, %s3090_s25, [#allocation4]  }
   0xc   :  { %3086 = dma.done.wait [#allocation4], 16  }
   0xd   :  { %3087 = vsyncadd [#allocation4], 4294967280 }
   0xe   :  { %54 = sfence }
   0xf   :  { %vm136_vm0 = vcmask 1046528   ;;  %v3091_v0 = vmov 0.0   ;;  %v2885_v1 = vld [vmem:[%s3911_s1] sm:$0x7f]   ;;  %vm123_vm1 = vcmask 113664   ;;  %v2888_v5 = vld [vmem:[%s3910_s0 + $0x8] sm:$0xff]   ;;  %v318_v55 = vlaneseq }
  0x10   :  { %2675 = vmatprep.subr.bf16.mxu1 %v3091_v0  ;;  %v3174_v2 = vld [vmem:[%s3912_s2] sm:$0xff]   ;;  %2875 = vmatprep.subr.msk.bf16.mxu0 %vm136_vm0, %v2885_v1  ;;  %v138_v3 = vsel %vm136_vm0, %v2885_v1, 0  ;;  %v3188_v6 = vld [vmem:[%s3912_s2 + $0x8] sm:$0xff]   ;;  %vm3092_vm2 = vmmov 0   ;;  %v3093_v7 = vmov 0   ;;  %s3094_s18 = smov 64  }
  0x11   :  { %v2887_v4 = vld [vmem:[%s3910_s0] sm:$0xff]   ;;  %2676 = vmatpush3.bf16.msra.mxu1 %v3174_v2  ;;  %2666 = vmatpush3.bf16.msra.mxu0 %v138_v3  ;;  %s3095_s19 = smov 32   ;;  %v3225_v31 = vld [vmem:[%s3915_s5 + $0x8] sm:$0xff]   ;;  %s70_s24 = sld [smem:[#allocation2]]  ;;  %vm300_vm4 = vcmask 1048320   ;;  %v319_v57 = vshrl.u32 %v318_v55, 7 }
  0x12   :  { %2667 = vmatprep.mubr.msk.bf16.mxu0 %vm123_vm1, %v2887_v4  ;;  %2677 = vmatprep.subr.bf16.mxu1 %v3091_v0  ;;  %v3201_v8 = vld [vmem:[%s3913_s3] ss:$0 sm:$0xff]  ;;  %v3096_v53 = vmov 1966171168   ;;  %vm225_vm6 = vcmask 261120   ;;  %s3097_s27 = smov 96  }
  0x13   :  { %2679 = vmatprep.mubr.msk.bf16.mxu1 %vm3092_vm2, %v3091_v0  ;;  %2691 = vmatprep.subr.bf16.mxu0 %v3091_v0  ;;  %v3219_v30 = vld [vmem:[%s3915_s5] sm:$0xff]   ;;  %v316_v54 = vunpack.c.l.s4 %v3096_v53  ;;  %v3263_v3 = vsub.s32 0, %v319_v57  ;;  %s2508_s21 = sld [smem:[#allocation2 + $0x1]]  ;;  %s3098_s20 = smov [#allocation5]  }
  0x14   :  { %2668 = vmatmul.mubr.msk.bf16.vlgmr.msra.gmra.mrb[0].mxu0 %vm123_vm1, %v2888_v5  ;;  %v3259_v63 = vld [vmem:[%s3917_s7] sm:$0x1] }
  0x15   :  { %2678 = vmatpush3.bf16.msra.mxu1 %v3188_v6  ;;  %v317_v56 = vunpack.c.0.s8 %v316_v54 }
  0x16   :  { %2683 = vmatprep.subr.bf16.mxu1 %v3091_v0 }
  0x17   :  { %v3236_v32 = vstv %s70_s24  ;;  %v3248_v58 = vsub.s32 %v317_v56, %v319_v57 }
  0x18   :  { %2680 = vmatmul.mubr.bf16.vlgmr.msra.gmra.mrb[0].mxu1 %v3093_v7  ;;  %v205_v33 = vsub.f32 0.0, %v3236_v32 }
  0x19   :  { %2687 = vmatprep.mubr.msk.bf16.mxu1 %vm3092_vm2, %v3091_v0  ;;  %2684 = vmatpush3.bf16.msra.mxu1 %v3219_v30 }
  0x1a   :  { %2685 = vmatprep.subr.bf16.mxu1 %v3091_v0  ;;  %vm206_vm3 = vcmp.gt.f32.partialorder %v205_v33, 0.0 }
  0x1b   :  { %v2520_v34 = vsel %vm206_vm3, 1.0, %v3091_v0 }
  0x1c   :  { %v294_v35 = vmul.f32 %v2520_v34, %v3236_v32 }
  0x1d   :  { %2686 = vmatpush3.bf16.msra.mxu1 %v3225_v31 }
  0x1e   :  { %2699 = vmatprep.subr.bf16.mxu1 %v3091_v0 }
  0x20   :  { %2688 = vmatmul.mubr.bf16.vlgmr.msra.gmra.mrb[4].mxu1 %v3093_v7 }
  0x21   :  { %2700 = vmatpush3.bf16.msra.mxu1 %v3174_v2  ;;  %2703 = vmatprep.mubr.msk.bf16.mxu1 %vm3092_vm2, %v3091_v0 }
  0x22   :  { %2701 = vmatprep.subr.bf16.mxu1 %v3091_v0 }
  0x25   :  { %2702 = vmatpush3.bf16.msra.mxu1 %v3188_v6 }
  0x26   :  { %2715 = vmatprep.subr.bf16.mxu1 %v3091_v0 }
  0xe7   :  { %v3203_v9 = vpop.f32.mrb[0].mxu0 }
  0xe8   :  { %v174_v10 = vpop.f32.mrb[1].mxu0 }
  0xe9   :  { %v175_v11 = vadd.f32 %v3201_v8, %v174_v10  ;;  %v3206_v12 = vpop.f32.mrb[2].mxu0 }
  0xea   :  { %v3208_v13 = vpop.f32.mrb[3].mxu0 }
  0xeb   :  { %v263_v14 = vpop.f32.mrb[0].mxu1 }
  0xec   :  { %v269_v15 = vadd.f32 %v263_v14, %v175_v11  ;;  %v2681_v16 = vpop.f32.mrb[1].mxu1 }
  0xed   :  { %v266_v17 = vpop.f32.mrb[2].mxu1 }
  0xee   :  { %2898 = vtanh.f32 %v269_v15  ;;  %v2682_v18 = vpop.f32.mrb[3].mxu1  ;;  %v2524_v20 = vmul.f32 -1.442695, %v269_v15 }
  0xf0   :  { %2900 = vpow2.f32 %v2524_v20 }
  0xf3   :  { %v3261_v1 = vpop.f32.mrb[4].mxu1 }
  0xf4   :  { %v2689_v4 = vpop.f32.mrb[5].mxu1 }
  0xf5   :  { %v421_v7 = vpop.f32.mrb[6].mxu1 }
  0xf6   :  { %v2690_v11 = vpop.f32.mrb[7].mxu1 }
  0xf8   :  { %v2899_v19 = vpop.eup %2898 }
  0xf9   :  { %279 = vrot.lane.b32.xlu0 %v2899_v19, %s3094_s18  ;;  %v178_v19 = vadd.f32 %v3201_v8, %v3208_v13 }
  0xfa   :  { %v2901_v21 = vpop.eup %2900 }
  0xfb   :  { %v273_v22 = vadd.f32 1.0, %v2901_v21 }
  0xfd   :  { %2902 = vrcp.f32 %v273_v22 }
 0x107   :  { %v2903_v23 = vpop.eup %2902 }
 0x108   :  { %v277_v26 = vmul.f32 0.0, %v2903_v23 }
 0x16b   :  { %v280_v24 = vpop.permute.xlu0 %279 }
 0x16c   :  { %v282_v25 = vmul.f32 %v2903_v23, %v280_v24 }
 0x16e   :  { %284 = vrot.lane.b32.xlu0 %v282_v25, %s3095_s19 }
 0x1e0   :  { %v285_v27 = vpop.permute.xlu0 %284 }
 0x1e1   :  { %v3212_v28 = vadd.f32 %v285_v27, %v277_v26  ;;  %v3277_v26 = vld [vmem:[%s3918_s8] sm:$0x1] }
 0x1e3   :  { %2904 = vtanh.f32 %v3212_v28 }
 0x1ed   :  { %v2905_v29 = vpop.eup %2904 }
 0x1ee   :  { %290 = vrot.lane.b32.xlu1 %v2905_v29, %s3094_s18 }
 0x260   :  { %v291_v36 = vpop.permute.xlu1 %290 }
 0x261   :  { %v293_v37 = vmul.f32 %v2903_v23, %v291_v36 }
 0x263   :  { %v295_v38 = vsub.f32 %v293_v37, %v294_v35 }
 0x265   :  { %v296_v39 = vsub.f32 %v295_v38, %v3236_v32  ;;  %v514_v40 = vpack.c.bf16 %v295_v38, %v295_v38 }
 0x267   :  { %vm297_vm5 = vcmp.gt.f32.partialorder %v296_v39, 0.0  ;;  %516 = vrot.lane.b32.xlu1 %v514_v40, %s3095_s19  ;;  %v3286_v39 = vld [vmem:[%s3914_s4] sm:$0xff]   ;;  %v2893_v40 = vld [vmem:[%s3910_s0 + $0x10] sm:$0xff]  }
 0x268   :  { %v3244_v41 = vsel %vm297_vm5, 1.0, %v3091_v0  ;;  %2692 = vmatpush3.bf16.msra.mxu0 %v3286_v39  ;;  %2671 = vmatprep.mubr.msk.bf16.mxu0 %vm123_vm1, %v2893_v40 }
 0x269   :  { %v301_v42 = vsel %vm300_vm4, %v3244_v41, 0.0  ;;  %2693 = vmatprep.subr.bf16.mxu0 %v3091_v0  ;;  %v586_v57 = vmul.f32 %v3244_v41, %v3236_v32 }
 0x26a   :  { %v302_v43 = vrot.slane %v301_v42, 4 }
 0x26c   :  { %v303_v44 = vadd.f32 %v302_v43, %v301_v42  ;;  %v2894_v42 = vld [vmem:[%s3910_s0 + $0x18] sm:$0xff]   ;;  %v3299_v43 = vld [vmem:[%s3914_s4 + $0x8] sm:$0xff]  }
 0x26d   :  { %2672 = vmatmul.mubr.msk.bf16.gmra.mrb[4].mxu0 %vm123_vm1, %v2894_v42 }
 0x26e   :  { %v304_v45 = vrot.slane %v303_v44, 2  ;;  %2695 = vmatprep.mubr.msk.bf16.mxu0 %vm3092_vm2, %v3091_v0  ;;  %2694 = vmatpush3.bf16.msra.mxu0 %v3299_v43 }
 0x26f   :  { %2707 = vmatprep.subr.bf16.mxu0 %v3091_v0 }
 0x270   :  { %v305_v46 = vadd.f32 %v304_v45, %v303_v44 }
 0x272   :  { %v306_v47 = vrot.slane %v305_v46, 1 }
 0x274   :  { %v307_v48 = vadd.f32 %v306_v47, %v305_v46 }
 0x276   :  { %v309_v49 = vmul.f32 0.125, %v307_v48 }
 0x278   :  { %v310_v50 = vmul.f32 %v309_v49, %v309_v49 }
 0x27a   :  { %v311_v51 = vsub.f32 %v309_v49, %v310_v50 }
 0x27c   :  { %v312_v52 = vadd.f32 1e-05, %v311_v51 }
 0x27e   :  { %2906 = vrsqrt.f32 %v312_v52 }
 0x288   :  { %v2907_v59 = vpop.eup %2906 }
 0x289   :  { %v321_v60 = vrot.slane %v2907_v59, %v3248_v58 }
 0x28b   :  { %v328_v61 = vrot.slane %v321_v60, %v3248_v58 }
 0x28d   :  { %329 = vrot.lane.b32.xlu0 %v328_v61, %s3095_s19 }
 0x2d9   :  { %v517_v62 = vpop.permute.xlu1 %516 }
 0x2da   :  { %2704 = vmatmul.mubr.msk.bf16.vlgmr.msra.gmra.mrb[8].mxu1 %vm225_vm6, %v517_v62 }
 0x2db   :  { %2719 = vmatprep.mubr.msk.bf16.mxu1 %vm3092_vm2, %v3091_v0  ;;  %2716 = vmatpush3.bf16.msra.mxu1 %v3286_v39 }
 0x2dc   :  { %2717 = vmatprep.subr.bf16.mxu1 %v3091_v0 }
 0x2df   :  { %2718 = vmatpush3.bf16.msra.mxu1 %v3299_v43 }
 0x2e0   :  { %2731 = vmatprep.subr.bf16.mxu1 %v3091_v0 }
 0x2ff   :  { %v330_v5 = vpop.permute.xlu0 %329 }
 0x300   :  { %v332_v10 = vmul.f32 %v330_v5, %v3259_v63 }
 0x302   :  { %v337_v14 = vrot.slane %v332_v10, %v3263_v3 }
 0x304   :  { %338 = vrot.lane.b32.xlu1 %v337_v14, %s3097_s27 }
 0x376   :  { %v339_v15 = vpop.permute.xlu1 %338 }
 0x377   :  { %v341_v16 = vmul.f32 %v339_v15, %v309_v49  ;;  %v361_v44 = vmul.f32 %v3244_v41, %v339_v15 }
 0x379   :  { %v349_v17 = vrot.slane %v341_v16, %v3248_v58 }
 0x37b   :  { %v356_v18 = vrot.slane %v349_v17, %v3248_v58 }
 0x37d   :  { %357 = vrot.lane.b32.xlu0 %v356_v18, %s3095_s19 }
 0x3ad   :  { %v555_v20 = vpop.f32.mrb[8].mxu1 }
 0x3ae   :  { %v561_v21 = vadd.f32 %v555_v20, %v178_v19  ;;  %v2705_v22 = vpop.f32.mrb[9].mxu1 }
 0x3af   :  { %v558_v23 = vpop.f32.mrb[10].mxu1  ;;  %v3350_v22 = vld [vmem:[%s3916_s6] ss:$0 sm:$0xff] }
 0x3b0   :  { %2908 = vtanh.f32 %v561_v21  ;;  %v2706_v24 = vpop.f32.mrb[11].mxu1  ;;  %v2534_v13 = vmul.f32 -1.442695, %v561_v21 }
 0x3b2   :  { %2910 = vpow2.f32 %v2534_v13 }
 0x3ba   :  { %v2909_v25 = vpop.eup %2908 }
 0x3bb   :  { %571 = vrot.lane.b32.xlu0 %v2909_v25, %s3094_s18 }
 0x3bc   :  { %v2911_v34 = vpop.eup %2910 }
 0x3bd   :  { %v565_v35 = vadd.f32 1.0, %v2911_v34 }
 0x3bf   :  { %2912 = vrcp.f32 %v565_v35 }
 0x3c9   :  { %v2913_v36 = vpop.eup %2912 }
 0x3ca   :  { %v569_v48 = vmul.f32 %v2913_v36, %v3212_v28  ;;  %v3325_v28 = vpop.f32.mrb[4].mxu0 }
 0x3cb   :  { %v3327_v53 = vpop.f32.mrb[5].mxu0 }
 0x3cc   :  { %v3329_v54 = vpop.f32.mrb[6].mxu0 }
 0x3cd   :  { %v3331_v55 = vpop.f32.mrb[7].mxu0 }
 0x3ef   :  { %v358_v27 = vpop.permute.xlu0 %357 }
 0x3f0   :  { %v360_v29 = vsub.f32 %v3277_v26, %v358_v27 }
 0x3f2   :  { %v366_v33 = vrot.slane %v360_v29, %v3263_v3 }
 0x3f4   :  { %367 = vrot.lane.b32.xlu1 %v366_v33, %s3097_s27 }
 0x42d   :  { %v572_v37 = vpop.permute.xlu0 %571 }
 0x42e   :  { %v574_v38 = vmul.f32 %v2913_v36, %v572_v37 }
 0x430   :  { %576 = vrot.lane.b32.xlu0 %v574_v38, %s3095_s19 }
 0x466   :  { %v368_v45 = vpop.permute.xlu1 %367 }
 0x467   :  { %v370_v46 = vadd.f32 %v368_v45, %v361_v44 }
 0x469   :  { %v371_v47 = vpack.c.bf16 %v370_v46, %v370_v46 }
 0x46b   :  { %425 = vrot.lane.b32.xlu1 %v371_v47, %s3095_s19 }
 0x4a2   :  { %v577_v49 = vpop.permute.xlu0 %576 }
 0x4a3   :  { %v3314_v50 = vadd.f32 %v577_v49, %v569_v48 }
 0x4a5   :  { %2914 = vtanh.f32 %v3314_v50 }
 0x4af   :  { %v2915_v51 = vpop.eup %2914 }
 0x4b0   :  { %582 = vrot.lane.b32.xlu1 %v2915_v51, %s3094_s18 }
 0x4dd   :  { %v426_v52 = vpop.permute.xlu1 %425 }
 0x4de   :  { %2696 = vmatmul.mubr.msk.bf16.vlgmr.msra.gmra.mrb[8].mxu0 %vm225_vm6, %v426_v52 }
 0x4df   :  { %2708 = vmatpush3.bf16.msra.mxu0 %v3219_v30  ;;  %2711 = vmatprep.mubr.msk.bf16.mxu0 %vm3092_vm2, %v3091_v0 }
 0x4e0   :  { %2709 = vmatprep.subr.bf16.mxu0 %v3091_v0 }
 0x4e3   :  { %2710 = vmatpush3.bf16.msra.mxu0 %v3225_v31 }
 0x4e4   :  { %2723 = vmatprep.subr.bf16.mxu0 %v3091_v0 }
 0x522   :  { %v583_v56 = vpop.permute.xlu1 %582 }
 0x523   :  { %v585_v59 = vmul.f32 %v2913_v36, %v583_v56 }
 0x525   :  { %v3335_v60 = vsub.f32 %v585_v59, %v586_v57 }
 0x527   :  { %v588_v61 = vsub.f32 %v3335_v60, %v3236_v32 }
 0x529   :  { %vm589_vm7 = vcmp.gt.f32.partialorder %v588_v61, 0.0 }
 0x52a   :  { %v3340_v62 = vsel %vm589_vm7, 1.0, %v3091_v0  ;;  %vm2491_vm7 = vcmask 64512  }
 0x52b   :  { %v592_v4 = vsel %vm300_vm4, %v3340_v62, 0.0 }
 0x52c   :  { %v593_v5 = vrot.slane %v592_v4, 4 }
 0x52e   :  { %v594_v7 = vadd.f32 %v593_v5, %v592_v4  ;;  %v3369_v4 = vstv %s2508_s21  ;;  %s2499_s21 = sshll.u32 %s3098_s20, 4  ;;  %s2500_s21 = int_to_ptr.vmem [resolvable:$true] %s2499_s21 }
 0x52f   :  { %v209_v5 = vsub.f32 0.0, %v3369_v4  ;;  %s3064_s22 = scalar_lea.vmem %s2500_s21, 128  ;;  %p3069_p6 = scmp.lt.s32.totalorder %s2500_s21, %s2500_s21 }
 0x530   :  { %v595_v10 = vrot.slane %v594_v7, 2  ;;  %p3065_p5 = scmp.ne.s32.totalorder %s2500_s21, %s3064_s22  ;;  %p3070_p7 = scmp.lt.s32.totalorder %s3064_s22, %s3064_s22 }
 0x531   :  { %vm210_vm8 = vcmp.gt.f32.partialorder %v209_v5, 0.0 }
 0x532   :  { %v596_v11 = vadd.f32 %v595_v10, %v594_v7  ;;  %v2521_v7 = vsel %vm210_vm8, 1.0, %v3091_v0  ;;  %p3071_p8 = por %p3070_p7, %p3069_p6 }
 0x534   :  { %v597_v14 = vrot.slane %v596_v11, 1  ;;  %p3072_p9 = pnand %p3071_p8, %p3065_p5 }
 0x536   :  { %v598_v15 = vadd.f32 %v597_v14, %v596_v11  ;;  %v507_v11 = vmul.f32 %v2521_v7, %v3369_v4 }
 0x538   :  { %v599_v41 = vmul.f32 0.125, %v598_v15 }
 0x53a   :  { %v600_v16 = vmul.f32 %v599_v41, %v599_v41 }
 0x53c   :  { %v601_v17 = vsub.f32 %v599_v41, %v600_v16 }
 0x53e   :  { %v602_v18 = vadd.f32 1e-05, %v601_v17 }
 0x540   :  { %2916 = vrsqrt.f32 %v602_v18 }
 0x54a   :  { %v2917_v19 = vpop.eup %2916 }
 0x54b   :  { %v611_v20 = vrot.slane %v2917_v19, %v3248_v58 }
 0x54d   :  { %v618_v21 = vrot.slane %v611_v20, %v3248_v58  ;;  %v787_v20 = vpack.c.bf16 %v3335_v60, %v3335_v60 }
 0x54f   :  { %619 = vrot.lane.b32.xlu0 %v618_v21, %s3095_s19 }
 0x5b1   :  { %v476_v23 = vpop.f32.mrb[8].mxu0 }
 0x5b2   :  { %v477_v24 = vadd.f32 %v476_v23, %v3261_v1  ;;  %v2697_v25 = vpop.f32.mrb[9].mxu0 }
 0x5b3   :  { %v479_v27 = vpop.f32.mrb[10].mxu0 }
 0x5b4   :  { %v482_v29 = vadd.f32 %v3350_v22, %v477_v24  ;;  %v2698_v33 = vpop.f32.mrb[11].mxu0 }
 0x5b6   :  { %2918 = vtanh.f32 %v482_v29  ;;  %v2531_v37 = vmul.f32 -1.442695, %v482_v29 }
 0x5b8   :  { %2920 = vpow2.f32 %v2531_v37 }
 0x5c0   :  { %v2919_v13 = vpop.eup %2918 }
 0x5c1   :  { %492 = vrot.lane.b32.xlu1 %v2919_v13, %s3094_s18  ;;  %v620_v34 = vpop.permute.xlu0 %619 }
 0x5c2   :  { %v622_v35 = vmul.f32 %v620_v34, %v3259_v63  ;;  %v2921_v38 = vpop.eup %2920 }
 0x5c3   :  { %v486_v1 = vadd.f32 1.0, %v2921_v38  ;;  %v183_v38 = vadd.f32 %v3203_v9, %v3201_v8 }
 0x5c4   :  { %v627_v36 = vrot.slane %v622_v35, %v3263_v3 }
 0x5c5   :  { %2922 = vrcp.f32 %v486_v1 }
 0x5c6   :  { %628 = vrot.lane.b32.xlu0 %v627_v36, %s3097_s27 }
 0x5cf   :  { %v2923_v40 = vpop.eup %2922 }
 0x5d0   :  { %v490_v49 = vmul.f32 0.0, %v2923_v40 }
 0x633   :  { %v493_v42 = vpop.permute.xlu1 %492 }
 0x634   :  { %v495_v44 = vmul.f32 %v2923_v40, %v493_v42 }
 0x636   :  { %497 = vrot.lane.b32.xlu1 %v495_v44, %s3095_s19 }
 0x638   :  { %v629_v45 = vpop.permute.xlu0 %628 }
 0x639   :  { %v631_v46 = vmul.f32 %v629_v45, %v599_v41  ;;  %v651_v10 = vmul.f32 %v3340_v62, %v629_v45 }
 0x63b   :  { %v639_v47 = vrot.slane %v631_v46, %v3248_v58 }
 0x63d   :  { %v646_v48 = vrot.slane %v639_v47, %v3248_v58 }
 0x63f   :  { %647 = vrot.lane.b32.xlu0 %v646_v48, %s3095_s19 }
 0x6a8   :  { %v498_v51 = vpop.permute.xlu1 %497 }
 0x6a9   :  { %v3362_v52 = vadd.f32 %v498_v51, %v490_v49 }
 0x6ab   :  { %2924 = vtanh.f32 %v3362_v52 }
 0x6b1   :  { %v648_v56 = vpop.permute.xlu0 %647 }
 0x6b2   :  { %v650_v57 = vsub.f32 %v3277_v26, %v648_v56 }
 0x6b4   :  { %v656_v59 = vrot.slane %v650_v57, %v3263_v3 }
 0x6b5   :  { %v2925_v61 = vpop.eup %2924 }
 0x6b6   :  { %657 = vrot.lane.b32.xlu0 %v656_v59, %s3097_s27  ;;  %503 = vrot.lane.b32.xlu1 %v2925_v61, %s3094_s18 }
 0x728   :  { %v658_v14 = vpop.permute.xlu0 %657  ;;  %v504_v15 = vpop.permute.xlu1 %503 }
 0x729   :  { %v660_v41 = vadd.f32 %v658_v14, %v651_v10  ;;  %v506_v16 = vmul.f32 %v2923_v40, %v504_v15 }
 0x72b   :  { %v661_v17 = vpack.c.bf16 %v660_v41, %v660_v41  ;;  %v3375_v18 = vsub.f32 %v506_v16, %v507_v11 }
 0x72d   :  { %710 = vrot.lane.b32.xlu0 %v661_v17, %s3095_s19  ;;  %v662_v19 = vpack.c.bf16 %v3375_v18, %v3375_v18 }
 0x72f   :  { %664 = vrot.lane.b32.xlu1 %v662_v19, %s3095_s19 }
 0x733   :  { %789 = vrot.lane.b32.xlu1 %v787_v20, %s3095_s19 }
 0x79f   :  { %v711_v21 = vpop.permute.xlu0 %710 }
 0x7a0   :  { %2720 = vmatmul.mubr.msk.bf16.vlgmr.msra.gmra.mrb[12].mxu1 %vm225_vm6, %v711_v21 }
 0x7a1   :  { %v665_v23 = vpop.permute.xlu1 %664  ;;  %2732 = vmatpush3.bf16.msra.mxu1 %v3219_v30  ;;  %2735 = vmatprep.mubr.msk.bf16.mxu1 %vm3092_vm2, %v3091_v0 }
 0x7a2   :  { %2712 = vmatmul.mubr.msk.bf16.vlgmr.msra.gmra.mrb[12].mxu0 %vm225_vm6, %v665_v23  ;;  %2733 = vmatprep.subr.bf16.mxu1 %v3091_v0 }
 0x7a3   :  { %2724 = vmatpush3.bf16.msra.mxu0 %v3174_v2  ;;  %2727 = vmatprep.mubr.msk.bf16.mxu0 %vm3092_vm2, %v3091_v0 }
 0x7a4   :  { %2725 = vmatprep.subr.bf16.mxu0 %v3091_v0 }
 0x7a5   :  { %2734 = vmatpush3.bf16.msra.mxu1 %v3225_v31  ;;  %v790_v60 = vpop.permute.xlu1 %789 }
 0x7a6   :  { %2747 = vmatprep.subr.bf16.mxu1 %v3091_v0 }
 0x7a7   :  { %2726 = vmatpush3.bf16.msra.mxu0 %v3188_v6 }
 0x7a8   :  { %2739 = vmatprep.subr.bf16.mxu0 %v3091_v0 }
 0x7aa   :  { %2728 = vmatmul.mubr.msk.bf16.vlgmr.msra.gmra.mrb[16].mxu0 %vm225_vm6, %v790_v60 }
 0x7ab   :  { %2740 = vmatpush3.bf16.msra.mxu0 %v3286_v39  ;;  %2743 = vmatprep.mubr.msk.bf16.mxu0 %vm3092_vm2, %v3091_v0 }
 0x7ac   :  { %2741 = vmatprep.subr.bf16.mxu0 %v3091_v0 }
 0x7af   :  { %2742 = vmatpush3.bf16.msra.mxu0 %v3299_v43 }
 0x7b0   :  { %2755 = vmatprep.subr.bf16.mxu0 %v3091_v0 }
 0x873   :  { %v749_v24 = vpop.f32.mrb[12].mxu1 }
 0x874   :  { %v2721_v25 = vpop.f32.mrb[13].mxu1 }
 0x875   :  { %v703_v27 = vpop.f32.mrb[12].mxu0  ;;  %v752_v29 = vpop.f32.mrb[14].mxu1 }
 0x876   :  { %v750_v33 = vadd.f32 %v749_v24, %v703_v27  ;;  %v2713_v13 = vpop.f32.mrb[13].mxu0  ;;  %v2722_v34 = vpop.f32.mrb[15].mxu1 }
 0x877   :  { %v706_v35 = vpop.f32.mrb[14].mxu0 }
 0x878   :  { %v755_v36 = vadd.f32 %v3350_v22, %v750_v33  ;;  %v2714_v37 = vpop.f32.mrb[15].mxu0  ;;  %v859_v33 = vmul.f32 %v3340_v62, %v3236_v32 }
 0x87a   :  { %2926 = vtanh.f32 %v755_v36  ;;  %v2538_v48 = vmul.f32 -1.442695, %v755_v36 }
 0x87d   :  { %v828_v1 = vpop.f32.mrb[16].mxu0 }
 0x87e   :  { %v834_v40 = vadd.f32 %v828_v1, %v183_v38  ;;  %v2729_v42 = vpop.f32.mrb[17].mxu0 }
 0x87f   :  { %v831_v44 = vpop.f32.mrb[18].mxu0 }
 0x880   :  { %2928 = vtanh.f32 %v834_v40  ;;  %v2730_v45 = vpop.f32.mrb[19].mxu0  ;;  %v2541_v49 = vmul.f32 -1.442695, %v834_v40 }
 0x881   :  { %2930 = vpow2.f32 %v2538_v48 }
 0x882   :  { %2932 = vpow2.f32 %v2541_v49 }
 0x884   :  { %v2927_v46 = vpop.eup %2926 }
 0x885   :  { %765 = vrot.lane.b32.xlu0 %v2927_v46, %s3094_s18 }
 0x88a   :  { %v2929_v47 = vpop.eup %2928 }
 0x88b   :  { %844 = vrot.lane.b32.xlu1 %v2929_v47, %s3094_s18  ;;  %v2931_v51 = vpop.eup %2930 }
 0x88c   :  { %v759_v56 = vadd.f32 1.0, %v2931_v51  ;;  %v2933_v57 = vpop.eup %2932 }
 0x88d   :  { %v838_v9 = vadd.f32 1.0, %v2933_v57 }
 0x88e   :  { %2934 = vrcp.f32 %v759_v56 }
 0x88f   :  { %2936 = vrcp.f32 %v838_v9 }
 0x898   :  { %v2935_v59 = vpop.eup %2934 }
 0x899   :  { %v2937_v7 = vpop.eup %2936  ;;  %v763_v14 = vmul.f32 %v2935_v59, %v3362_v52  ;;  %v509_v52 = vsub.f32 %v3375_v18, %v3369_v4 }
 0x89a   :  { %v842_v16 = vmul.f32 %v2937_v7, %v3314_v50 }
 0x89b   :  { %vm510_vm9 = vcmp.gt.f32.partialorder %v509_v52, 0.0 }
 0x89c   :  { %v2532_v23 = vsel %vm510_vm9, 1.0, %v3091_v0 }
 0x89d   :  { %v780_v50 = vmul.f32 %v2532_v23, %v3369_v4 }
 0x8f7   :  { %v766_v61 = vpop.permute.xlu0 %765 }
 0x8f8   :  { %v768_v5 = vmul.f32 %v2935_v59, %v766_v61 }
 0x8fa   :  { %770 = vrot.lane.b32.xlu0 %v768_v5, %s3095_s19 }
 0x8fd   :  { %v845_v10 = vpop.permute.xlu1 %844 }
 0x8fe   :  { %v847_v11 = vmul.f32 %v2937_v7, %v845_v10 }
 0x900   :  { %849 = vrot.lane.b32.xlu1 %v847_v11, %s3095_s19 }
 0x96c   :  { %v771_v15 = vpop.permute.xlu0 %770 }
 0x96d   :  { %v3413_v41 = vadd.f32 %v771_v15, %v763_v14 }
 0x96f   :  { %2938 = vtanh.f32 %v3413_v41 }
 0x972   :  { %v850_v17 = vpop.permute.xlu1 %849 }
 0x973   :  { %v3417_v19 = vadd.f32 %v850_v17, %v842_v16 }
 0x975   :  { %2940 = vtanh.f32 %v3417_v19 }
 0x979   :  { %v2939_v20 = vpop.eup %2938 }
 0x97a   :  { %776 = vrot.lane.b32.xlu0 %v2939_v20, %s3094_s18  ;;  %v186_v20 = vadd.f32 %v3206_v12, %v3201_v8 }
 0x97f   :  { %v2941_v21 = vpop.eup %2940 }
 0x980   :  { %855 = vrot.lane.b32.xlu1 %v2941_v21, %s3094_s18 }
 0x9ec   :  { %v777_v60 = vpop.permute.xlu0 %776 }
 0x9ed   :  { %v779_v24 = vmul.f32 %v2935_v59, %v777_v60 }
 0x9ef   :  { %v3426_v25 = vsub.f32 %v779_v24, %v780_v50 }
 0x9f1   :  { %v935_v27 = vpack.c.bf16 %v3426_v25, %v3426_v25 }
 0x9f2   :  { %v856_v29 = vpop.permute.xlu1 %855 }
 0x9f3   :  { %v858_v13 = vmul.f32 %v2937_v7, %v856_v29  ;;  %937 = vrot.lane.b32.xlu0 %v935_v27, %s3095_s19 }
 0x9f5   :  { %v860_v34 = vsub.f32 %v858_v13, %v859_v33 }
 0x9f7   :  { %v861_v35 = vsub.f32 %v860_v34, %v3236_v32  ;;  %v1060_v36 = vpack.c.bf16 %v860_v34, %v860_v34 }
 0x9f9   :  { %vm862_vm10 = vcmp.gt.f32.partialorder %v861_v35, 0.0  ;;  %1062 = vrot.lane.b32.xlu1 %v1060_v36, %s3095_s19 }
 0x9fa   :  { %v3436_v37 = vsel %vm862_vm10, 1.0, %v3091_v0 }
 0x9fb   :  { %v865_v38 = vsel %vm300_vm4, %v3436_v37, 0.0 }
 0x9fc   :  { %v866_v1 = vrot.slane %v865_v38, 4 }
 0x9fe   :  { %v867_v40 = vadd.f32 %v866_v1, %v865_v38 }
 0xa00   :  { %v868_v42 = vrot.slane %v867_v40, 2 }
 0xa02   :  { %v869_v62 = vadd.f32 %v868_v42, %v867_v40 }
 0xa04   :  { %v870_v44 = vrot.slane %v869_v62, 1 }
 0xa06   :  { %v871_v45 = vadd.f32 %v870_v44, %v869_v62 }
 0xa08   :  { %v872_v46 = vmul.f32 0.125, %v871_v45 }
 0xa0a   :  { %v873_v47 = vmul.f32 %v872_v46, %v872_v46 }
 0xa0c   :  { %v874_v48 = vsub.f32 %v872_v46, %v873_v47 }
 0xa0e   :  { %v875_v49 = vadd.f32 1e-05, %v874_v48  ;;  %v1132_v48 = vmul.f32 %v3436_v37, %v3236_v32 }
 0xa10   :  { %2942 = vrsqrt.f32 %v875_v49 }
 0xa1a   :  { %v2943_v51 = vpop.eup %2942 }
 0xa1b   :  { %v884_v56 = vrot.slane %v2943_v51, %v3248_v58 }
 0xa1d   :  { %v891_v57 = vrot.slane %v884_v56, %v3248_v58 }
 0xa1f   :  { %892 = vrot.lane.b32.xlu0 %v891_v57, %s3095_s19 }
 0xa65   :  { %v938_v9 = vpop.permute.xlu0 %937 }
 0xa66   :  { %2736 = vmatmul.mubr.msk.bf16.vlgmr.msra.gmra.mrb[16].mxu1 %vm225_vm6, %v938_v9 }
 0xa67   :  { %2748 = vmatpush3.bf16.msra.mxu1 %v3174_v2  ;;  %2751 = vmatprep.mubr.msk.bf16.mxu1 %vm3092_vm2, %v3091_v0 }
 0xa68   :  { %2749 = vmatprep.subr.bf16.mxu1 %v3091_v0 }
 0xa6b   :  { %2750 = vmatpush3.bf16.msra.mxu1 %v3188_v6  ;;  %v1063_v59 = vpop.permute.xlu1 %1062 }
 0xa6c   :  { %2763 = vmatprep.subr.bf16.mxu1 %v3091_v0 }
 0xa6e   :  { %2752 = vmatmul.mubr.msk.bf16.vlgmr.msra.gmra.mrb[20].mxu1 %vm225_vm6, %v1063_v59 }
 0xa6f   :  { %2764 = vmatpush3.bf16.msra.mxu1 %v3286_v39  ;;  %2767 = vmatprep.mubr.msk.bf16.mxu1 %vm3092_vm2, %v3091_v0 }
 0xa70   :  { %2765 = vmatprep.subr.bf16.mxu1 %v3091_v0 }
 0xa73   :  { %2766 = vmatpush3.bf16.msra.mxu1 %v3299_v43 }
 0xa74   :  { %2779 = vmatprep.subr.bf16.mxu1 %v3091_v0 }
 0xa91   :  { %v893_v2 = vpop.permute.xlu0 %892 }
 0xa92   :  { %v895_v61 = vmul.f32 %v893_v2, %v3259_v63 }
 0xa94   :  { %v900_v6 = vrot.slane %v895_v61, %v3263_v3 }
 0xa96   :  { %901 = vrot.lane.b32.xlu1 %v900_v6, %s3097_s27 }
 0xb08   :  { %v902_v5 = vpop.permute.xlu1 %901 }
 0xb09   :  { %v904_v7 = vmul.f32 %v902_v5, %v872_v46  ;;  %v924_v38 = vmul.f32 %v3436_v37, %v902_v5 }
 0xb0b   :  { %v912_v10 = vrot.slane %v904_v7, %v3248_v58 }
 0xb0d   :  { %v919_v11 = vrot.slane %v912_v10, %v3248_v58 }
 0xb0f   :  { %920 = vrot.lane.b32.xlu0 %v919_v11, %s3095_s19 }
 0xb39   :  { %v3463_v14 = vpop.f32.mrb[16].mxu1 }
 0xb3a   :  { %v2737_v15 = vpop.f32.mrb[17].mxu1 }
 0xb3b   :  { %v979_v16 = vpop.f32.mrb[18].mxu1 }
 0xb3c   :  { %v2738_v17 = vpop.f32.mrb[19].mxu1 }
 0xb41   :  { %v1101_v21 = vpop.f32.mrb[20].mxu1 }
 0xb42   :  { %v1107_v52 = vadd.f32 %v1101_v21, %v186_v20  ;;  %v2753_v23 = vpop.f32.mrb[21].mxu1 }
 0xb43   :  { %v1104_v60 = vpop.f32.mrb[22].mxu1 }
 0xb44   :  { %2944 = vtanh.f32 %v1107_v52  ;;  %v2754_v50 = vpop.f32.mrb[23].mxu1  ;;  %v2548_v13 = vmul.f32 -1.442695, %v1107_v52 }
 0xb46   :  { %2946 = vpow2.f32 %v2548_v13 }
 0xb4e   :  { %v2945_v24 = vpop.eup %2944 }
 0xb4f   :  { %1117 = vrot.lane.b32.xlu0 %v2945_v24, %s3094_s18 }
 0xb50   :  { %v2947_v34 = vpop.eup %2946 }
 0xb51   :  { %v1111_v8 = vadd.f32 1.0, %v2947_v34 }
 0xb53   :  { %2948 = vrcp.f32 %v1111_v8 }
 0xb5d   :  { %v2949_v12 = vpop.eup %2948 }
 0xb5e   :  { %v1115_v62 = vmul.f32 %v2949_v12, %v3417_v19 }
 0xb81   :  { %v921_v27 = vpop.permute.xlu0 %920 }
 0xb82   :  { %v923_v29 = vsub.f32 %v3277_v26, %v921_v27 }
 0xb84   :  { %v929_v33 = vrot.slane %v923_v29, %v3263_v3 }
 0xb86   :  { %930 = vrot.lane.b32.xlu1 %v929_v33, %s3097_s27 }
 0xbc1   :  { %v1118_v35 = vpop.permute.xlu0 %1117 }
 0xbc2   :  { %v1120_v36 = vmul.f32 %v2949_v12, %v1118_v35 }
 0xbc4   :  { %1122 = vrot.lane.b32.xlu0 %v1120_v36, %s3095_s19 }
 0xbf8   :  { %v931_v1 = vpop.permute.xlu1 %930 }
 0xbf9   :  { %v933_v40 = vadd.f32 %v931_v1, %v924_v38 }
 0xbfb   :  { %v934_v42 = vpack.c.bf16 %v933_v40, %v933_v40 }
 0xbfd   :  { %983 = vrot.lane.b32.xlu1 %v934_v42, %s3095_s19 }
 0xc36   :  { %v1123_v44 = vpop.permute.xlu0 %1122 }
 0xc37   :  { %v3475_v45 = vadd.f32 %v1123_v44, %v1115_v62 }
 0xc39   :  { %2950 = vtanh.f32 %v3475_v45 }
 0xc43   :  { %v2951_v46 = vpop.eup %2950 }
 0xc44   :  { %1128 = vrot.lane.b32.xlu1 %v2951_v46, %s3094_s18 }
 0xc6f   :  { %v984_v47 = vpop.permute.xlu1 %983 }
 0xc70   :  { %2744 = vmatmul.mubr.msk.bf16.vlgmr.msra.gmra.mrb[20].mxu0 %vm225_vm6, %v984_v47 }
 0xc71   :  { %2756 = vmatpush3.bf16.msra.mxu0 %v3219_v30  ;;  %2759 = vmatprep.mubr.msk.bf16.mxu0 %vm3092_vm2, %v3091_v0 }
 0xc72   :  { %2757 = vmatprep.subr.bf16.mxu0 %v3091_v0 }
 0xc75   :  { %2758 = vmatpush3.bf16.msra.mxu0 %v3225_v31 }
 0xc76   :  { %2771 = vmatprep.subr.bf16.mxu0 %v3091_v0 }
 0xcb6   :  { %v1129_v19 = vpop.permute.xlu1 %1128 }
 0xcb7   :  { %v1131_v49 = vmul.f32 %v2949_v12, %v1129_v19 }
 0xcb9   :  { %v3488_v51 = vsub.f32 %v1131_v49, %v1132_v48  ;;  %v782_v49 = vsub.f32 %v3426_v25, %v3369_v4 }
 0xcbb   :  { %v1134_v56 = vsub.f32 %v3488_v51, %v3236_v32  ;;  %vm783_vm12 = vcmp.gt.f32.partialorder %v782_v49, 0.0 }
 0xcbd   :  { %vm1135_vm11 = vcmp.gt.f32.partialorder %v1134_v56, 0.0 }
 0xcbe   :  { %v3493_v57 = vsel %vm1135_vm11, 1.0, %v3091_v0 }
 0xcbf   :  { %v1138_v9 = vsel %vm300_vm4, %v3493_v57, 0.0 }
 0xcc0   :  { %v1139_v59 = vrot.slane %v1138_v9, 4 }
 0xcc2   :  { %v1140_v2 = vadd.f32 %v1139_v59, %v1138_v9 }
 0xcc4   :  { %v1141_v61 = vrot.slane %v1140_v2, 2 }
 0xcc6   :  { %v1142_v6 = vadd.f32 %v1141_v61, %v1140_v2  ;;  %v786_v61 = vadd.f32 %v3426_v25, %v3375_v18 }
 0xcc8   :  { %v1143_v5 = vrot.slane %v1142_v6, 1 }
 0xcca   :  { %v1144_v7 = vadd.f32 %v1143_v5, %v1142_v6 }
 0xccc   :  { %v1145_v37 = vmul.f32 0.125, %v1144_v7 }
 0xcce   :  { %v1146_v10 = vmul.f32 %v1145_v37, %v1145_v37 }
 0xcd0   :  { %v1147_v11 = vsub.f32 %v1145_v37, %v1146_v10 }
 0xcd2   :  { %v1148_v15 = vadd.f32 1e-05, %v1147_v11  ;;  %v1333_v11 = vpack.c.bf16 %v3488_v51, %v3488_v51  ;;  %v3555_v51 = vld [vmem:[%s3912_s2 + $0x8] sm:$0xff]  }
 0xcd4   :  { %2952 = vrsqrt.f32 %v1148_v15  ;;  %v3542_v15 = vld [vmem:[%s3912_s2] sm:$0xff]  }
 0xcde   :  { %v2953_v16 = vpop.eup %2952 }
 0xcdf   :  { %v1157_v17 = vrot.slane %v2953_v16, %v3248_v58 }
 0xce1   :  { %v1164_v20 = vrot.slane %v1157_v17, %v3248_v58 }
 0xce3   :  { %1165 = vrot.lane.b32.xlu0 %v1164_v20, %s3095_s19 }
 0xd43   :  { %v1022_v21 = vpop.f32.mrb[20].mxu0 }
 0xd44   :  { %v1023_v52 = vadd.f32 %v1022_v21, %v3463_v14  ;;  %v2745_v23 = vpop.f32.mrb[21].mxu0 }
 0xd45   :  { %v1025_v60 = vpop.f32.mrb[22].mxu0 }
 0xd46   :  { %v1028_v50 = vadd.f32 %v3350_v22, %v1023_v52  ;;  %v2746_v24 = vpop.f32.mrb[23].mxu0 }
 0xd48   :  { %2954 = vtanh.f32 %v1028_v50  ;;  %v2545_v34 = vmul.f32 -1.442695, %v1028_v50 }
 0xd4a   :  { %2956 = vpow2.f32 %v2545_v34 }
 0xd52   :  { %v2955_v27 = vpop.eup %2954 }
 0xd53   :  { %1038 = vrot.lane.b32.xlu1 %v2955_v27, %s3094_s18  ;;  %v3572_v27 = vld [vmem:[%s3913_s3] ss:$0 sm:$0xff] }
 0xd54   :  { %v2957_v8 = vpop.eup %2956 }
 0xd55   :  { %v1166_v29 = vpop.permute.xlu0 %1165  ;;  %v1032_v14 = vadd.f32 1.0, %v2957_v8 }
 0xd56   :  { %v1168_v33 = vmul.f32 %v1166_v29, %v3259_v63  ;;  %v191_v29 = vadd.f32 %v3572_v27, %v3327_v53 }
 0xd57   :  { %2958 = vrcp.f32 %v1032_v14 }
 0xd58   :  { %v1173_v13 = vrot.slane %v1168_v33, %v3263_v3 }
 0xd5a   :  { %1174 = vrot.lane.b32.xlu0 %v1173_v13, %s3097_s27 }
 0xd61   :  { %v2959_v12 = vpop.eup %2958 }
 0xd62   :  { %v1036_v42 = vmul.f32 %v2959_v12, %v3413_v41  ;;  %v2539_v41 = vsel %vm783_vm12, 1.0, %v3091_v0 }
 0xd63   :  { %v1053_v59 = vmul.f32 %v2539_v41, %v3369_v4 }
 0xdc5   :  { %v1039_v35 = vpop.permute.xlu1 %1038 }
 0xdc6   :  { %v1041_v36 = vmul.f32 %v2959_v12, %v1039_v35 }
 0xdc8   :  { %1043 = vrot.lane.b32.xlu1 %v1041_v36, %s3095_s19 }
 0xdcc   :  { %v1175_v38 = vpop.permute.xlu0 %1174 }
 0xdcd   :  { %v1177_v1 = vmul.f32 %v1175_v38, %v1145_v37  ;;  %v1197_v9 = vmul.f32 %v3493_v57, %v1175_v38 }
 0xdcf   :  { %v1185_v40 = vrot.slane %v1177_v1, %v3248_v58 }
 0xdd1   :  { %v1192_v63 = vrot.slane %v1185_v40, %v3248_v58 }
 0xdd3   :  { %1193 = vrot.lane.b32.xlu0 %v1192_v63, %s3095_s19 }
 0xe3a   :  { %v1044_v62 = vpop.permute.xlu1 %1043 }
 0xe3b   :  { %v3511_v44 = vadd.f32 %v1044_v62, %v1036_v42 }
 0xe3d   :  { %2960 = vtanh.f32 %v3511_v44 }
 0xe45   :  { %v1194_v46 = vpop.permute.xlu0 %1193 }
 0xe46   :  { %v1196_v47 = vsub.f32 %v3277_v26, %v1194_v46 }
 0xe47   :  { %v2961_v19 = vpop.eup %2960 }
 0xe48   :  { %v1202_v48 = vrot.slane %v1196_v47, %v3263_v3  ;;  %1049 = vrot.lane.b32.xlu1 %v2961_v19, %s3094_s18 }
 0xe4a   :  { %1203 = vrot.lane.b32.xlu0 %v1202_v48, %s3097_s27 }
 0xeba   :  { %v1050_v56 = vpop.permute.xlu1 %1049 }
 0xebb   :  { %v1052_v2 = vmul.f32 %v2959_v12, %v1050_v56 }
 0xebc   :  { %v1204_v26 = vpop.permute.xlu0 %1203 }
 0xebd   :  { %v3525_v6 = vsub.f32 %v1052_v2, %v1053_v59  ;;  %v1206_v5 = vadd.f32 %v1204_v26, %v1197_v9 }
 0xebf   :  { %v3528_v7 = vadd.f32 %v3525_v6, %v786_v61  ;;  %v1207_v37 = vpack.c.bf16 %v1206_v5, %v1206_v5  ;;  %v1208_v10 = vpack.c.bf16 %v3525_v6, %v3525_v6 }
 0xec1   :  { %1256 = vrot.lane.b32.xlu0 %v1207_v37, %s3095_s19  ;;  %1210 = vrot.lane.b32.xlu1 %v1208_v10, %s3095_s19 }
 0xec5   :  { %1335 = vrot.lane.b32.xlu1 %v1333_v11, %s3095_s19 }
 0xf33   :  { %v1257_v18 = vpop.permute.xlu0 %1256  ;;  %v1211_v25 = vpop.permute.xlu1 %1210 }
 0xf34   :  { %2760 = vmatmul.mubr.msk.bf16.vlgmr.msra.gmra.mrb[24].mxu0 %vm225_vm6, %v1211_v25  ;;  %2768 = vmatmul.mubr.msk.bf16.vlgmr.msra.gmra.mrb[24].mxu1 %vm225_vm6, %v1257_v18 }
 0xf35   :  { %2772 = vmatpush3.bf16.msra.mxu0 %v3542_v15  ;;  %2775 = vmatprep.mubr.msk.bf16.mxu0 %vm3092_vm2, %v3091_v0 }
 0xf36   :  { %2773 = vmatprep.subr.bf16.mxu0 %v3091_v0  ;;  %2780 = vmatpush3.bf16.msra.mxu1 %v3219_v30 }
 0xf37   :  { %2781 = vmatprep.subr.bf16.mxu1 %v3091_v0  ;;  %2783 = vmatprep.mubr.msk.bf16.mxu1 %vm3092_vm2, %v3091_v0  ;;  %v1336_v16 = vpop.permute.xlu1 %1335 }
 0xf39   :  { %2774 = vmatpush3.bf16.msra.mxu0 %v3555_v51 }
 0xf3a   :  { %2782 = vmatpush3.bf16.msra.mxu1 %v3225_v31  ;;  %2787 = vmatprep.subr.bf16.mxu0 %v3091_v0 }
 0xf3b   :  { %2795 = vmatprep.subr.bf16.mxu1 %v3091_v0 }
 0xf3c   :  { %2776 = vmatmul.mubr.msk.bf16.vlgmr.msra.gmra.mrb[28].mxu0 %vm225_vm6, %v1336_v16 }
 0xf3d   :  { %2788 = vmatpush3.bf16.msra.mxu0 %v3286_v39  ;;  %2791 = vmatprep.mubr.msk.bf16.mxu0 %vm3092_vm2, %v3091_v0 }
 0xf3e   :  { %2789 = vmatprep.subr.bf16.mxu0 %v3091_v0 }
 0xf41   :  { %2790 = vmatpush3.bf16.msra.mxu0 %v3299_v43 }
 0xf42   :  { %2803 = vmatprep.subr.bf16.mxu0 %v3091_v0 }
0x1007   :  { %v1249_v30 = vpop.f32.mrb[24].mxu0  ;;  %v1295_v31 = vpop.f32.mrb[24].mxu1 }
0x1008   :  { %v1296_v17 = vadd.f32 %v1295_v31, %v1249_v30  ;;  %v2761_v20 = vpop.f32.mrb[25].mxu0  ;;  %v2769_v21 = vpop.f32.mrb[25].mxu1 }
0x1009   :  { %v1252_v52 = vpop.f32.mrb[26].mxu0  ;;  %v1298_v23 = vpop.f32.mrb[26].mxu1 }
0x100a   :  { %v1301_v60 = vadd.f32 %v3350_v22, %v1296_v17  ;;  %v2762_v50 = vpop.f32.mrb[27].mxu0  ;;  %v2770_v24 = vpop.f32.mrb[27].mxu1 }
0x100c   :  { %2962 = vtanh.f32 %v1301_v60  ;;  %v2552_v36 = vmul.f32 -1.442695, %v1301_v60 }
0x100f   :  { %v1374_v33 = vpop.f32.mrb[28].mxu0 }
0x1010   :  { %v1380_v13 = vadd.f32 %v1374_v33, %v191_v29  ;;  %v2777_v34 = vpop.f32.mrb[29].mxu0 }
0x1011   :  { %v1377_v8 = vpop.f32.mrb[30].mxu0 }
0x1012   :  { %2964 = vtanh.f32 %v1380_v13  ;;  %v2778_v14 = vpop.f32.mrb[31].mxu0  ;;  %v2555_v38 = vmul.f32 -1.442695, %v1380_v13 }
0x1013   :  { %2966 = vpow2.f32 %v2552_v36 }
0x1014   :  { %2968 = vpow2.f32 %v2555_v38 }
0x1016   :  { %v2963_v12 = vpop.eup %2962 }
0x1017   :  { %1311 = vrot.lane.b32.xlu0 %v2963_v12, %s3094_s18 }
0x101c   :  { %v2965_v35 = vpop.eup %2964 }
0x101d   :  { %1390 = vrot.lane.b32.xlu1 %v2965_v35, %s3094_s18  ;;  %v2967_v1 = vpop.eup %2966 }
0x101e   :  { %v1305_v40 = vadd.f32 1.0, %v2967_v1  ;;  %v2969_v63 = vpop.eup %2968  ;;  %v3632_v1 = vld [vmem:[%s3917_s7] sm:$0x1] }
0x101f   :  { %v1384_v53 = vadd.f32 1.0, %v2969_v63 }
0x1020   :  { %2970 = vrcp.f32 %v1305_v40 }
0x1021   :  { %2972 = vrcp.f32 %v1384_v53 }
0x102a   :  { %v2971_v42 = vpop.eup %2970 }
0x102b   :  { %v2973_v47 = vpop.eup %2972  ;;  %v1309_v49 = vmul.f32 %v2971_v42, %v3511_v44  ;;  %v1055_v44 = vsub.f32 %v3525_v6, %v3369_v4  ;;  %v1405_v6 = vmul.f32 %v3493_v57, %v3236_v32 }
0x102c   :  { %v1388_v9 = vmul.f32 %v2973_v47, %v3475_v45 }
0x102d   :  { %vm1056_vm13 = vcmp.gt.f32.partialorder %v1055_v44, 0.0 }
0x102e   :  { %v2546_v5 = vsel %vm1056_vm13, 1.0, %v3091_v0 }
0x102f   :  { %v1326_v45 = vmul.f32 %v2546_v5, %v3369_v4  ;;  %v3648_v5 = vld [vmem:[%s3918_s8] sm:$0x1] }
0x1089   :  { %v1312_v62 = vpop.permute.xlu0 %1311 }
0x108a   :  { %v1314_v46 = vmul.f32 %v2971_v42, %v1312_v62 }
0x108c   :  { %1316 = vrot.lane.b32.xlu0 %v1314_v46, %s3095_s19 }
0x108f   :  { %v1391_v19 = vpop.permute.xlu1 %1390 }
0x1090   :  { %v1393_v48 = vmul.f32 %v2973_v47, %v1391_v19 }
0x1092   :  { %1395 = vrot.lane.b32.xlu1 %v1393_v48, %s3095_s19  ;;  %v194_v48 = vadd.f32 %v3572_v27, %v3331_v55 }
0x10fe   :  { %v1317_v41 = vpop.permute.xlu0 %1316 }
0x10ff   :  { %v3581_v56 = vadd.f32 %v1317_v41, %v1309_v49 }
0x1101   :  { %2974 = vtanh.f32 %v3581_v56 }
0x1104   :  { %v1396_v59 = vpop.permute.xlu1 %1395 }
0x1105   :  { %v3585_v2 = vadd.f32 %v1396_v59, %v1388_v9 }
0x1107   :  { %2976 = vtanh.f32 %v3585_v2 }
0x110b   :  { %v2975_v26 = vpop.eup %2974 }
0x110c   :  { %1322 = vrot.lane.b32.xlu0 %v2975_v26, %s3094_s18 }
0x1111   :  { %v2977_v61 = vpop.eup %2976 }
0x1112   :  { %1401 = vrot.lane.b32.xlu1 %v2977_v61, %s3094_s18 }
0x117e   :  { %v1323_v37 = vpop.permute.xlu0 %1322 }
0x117f   :  { %v1325_v10 = vmul.f32 %v2971_v42, %v1323_v37 }
0x1181   :  { %v3594_v11 = vsub.f32 %v1325_v10, %v1326_v45 }
0x1183   :  { %v3598_v18 = vadd.f32 %v3594_v11, %v3528_v7  ;;  %v1481_v25 = vpack.c.bf16 %v3594_v11, %v3594_v11 }
0x1184   :  { %v1402_v16 = vpop.permute.xlu1 %1401 }
0x1185   :  { %v1404_v30 = vmul.f32 %v2973_v47, %v1402_v16  ;;  %1483 = vrot.lane.b32.xlu0 %v1481_v25, %s3095_s19 }
0x1187   :  { %v1406_v31 = vsub.f32 %v1404_v30, %v1405_v6 }
0x1189   :  { %v1407_v17 = vsub.f32 %v1406_v31, %v3236_v32  ;;  %v1606_v20 = vpack.c.bf16 %v1406_v31, %v1406_v31 }
0x118b   :  { %vm1408_vm14 = vcmp.gt.f32.partialorder %v1407_v17, 0.0  ;;  %1608 = vrot.lane.b32.xlu1 %v1606_v20, %s3095_s19 }
0x118c   :  { %v3608_v7 = vsel %vm1408_vm14, 1.0, %v3091_v0 }
0x118d   :  { %v1411_v21 = vsel %vm300_vm4, %v3608_v7, 0.0 }
0x118e   :  { %v1412_v52 = vrot.slane %v1411_v21, 4 }
0x1190   :  { %v1413_v23 = vadd.f32 %v1412_v52, %v1411_v21 }
0x1192   :  { %v1414_v60 = vrot.slane %v1413_v23, 2 }
0x1194   :  { %v1415_v57 = vadd.f32 %v1414_v60, %v1413_v23 }
0x1196   :  { %v1416_v50 = vrot.slane %v1415_v57, 1 }
0x1198   :  { %v1417_v24 = vadd.f32 %v1416_v50, %v1415_v57 }
0x119a   :  { %v1418_v29 = vmul.f32 0.125, %v1417_v24  ;;  %v3665_v24 = vld [vmem:[%s3915_s5] sm:$0xff]  }
0x119c   :  { %v1419_v33 = vmul.f32 %v1418_v29, %v1418_v29 }
0x119e   :  { %v1420_v13 = vsub.f32 %v1418_v29, %v1419_v33  ;;  %v1678_v33 = vmul.f32 %v3608_v7, %v3236_v32 }
0x11a0   :  { %v1421_v34 = vadd.f32 1e-05, %v1420_v13 }
0x11a2   :  { %2978 = vrsqrt.f32 %v1421_v34 }
0x11ac   :  { %v2979_v8 = vpop.eup %2978 }
0x11ad   :  { %v1430_v14 = vrot.slane %v2979_v8, %v3248_v58 }
0x11af   :  { %v1437_v12 = vrot.slane %v1430_v14, %v3248_v58 }
0x11b1   :  { %1438 = vrot.lane.b32.xlu0 %v1437_v12, %s3095_s19 }
0x11f7   :  { %v1484_v35 = vpop.permute.xlu0 %1483 }
0x11f8   :  { %2784 = vmatmul.mubr.msk.bf16.vlgmr.msra.gmra.mrb[28].mxu1 %vm225_vm6, %v1484_v35 }
0x11f9   :  { %2796 = vmatpush3.bf16.msra.mxu1 %v3542_v15  ;;  %2799 = vmatprep.mubr.msk.bf16.mxu1 %vm3092_vm2, %v3091_v0 }
0x11fa   :  { %2797 = vmatprep.subr.bf16.mxu1 %v3091_v0 }
0x11fd   :  { %2798 = vmatpush3.bf16.msra.mxu1 %v3555_v51  ;;  %v1609_v36 = vpop.permute.xlu1 %1608 }
0x11fe   :  { %2811 = vmatprep.subr.bf16.mxu1 %v3091_v0 }
0x1200   :  { %2800 = vmatmul.mubr.msk.bf16.vlgmr.msra.gmra.mrb[32].mxu1 %vm225_vm6, %v1609_v36 }
0x1201   :  { %2812 = vmatpush3.bf16.msra.mxu1 %v3286_v39  ;;  %2815 = vmatprep.mubr.msk.bf16.mxu1 %vm3092_vm2, %v3091_v0 }
0x1202   :  { %2813 = vmatprep.subr.bf16.mxu1 %v3091_v0 }
0x1205   :  { %2814 = vmatpush3.bf16.msra.mxu1 %v3299_v43 }
0x1206   :  { %2827 = vmatprep.subr.bf16.mxu1 %v3091_v0 }
0x1223   :  { %v1439_v38 = vpop.permute.xlu0 %1438 }
0x1224   :  { %v1441_v40 = vmul.f32 %v3632_v1, %v1439_v38 }
0x1226   :  { %v1446_v63 = vrot.slane %v1441_v40, %v3263_v3 }
0x1228   :  { %1447 = vrot.lane.b32.xlu1 %v1446_v63, %s3097_s27 }
0x129a   :  { %v1448_v39 = vpop.permute.xlu1 %1447 }
0x129b   :  { %v1450_v53 = vmul.f32 %v1448_v39, %v1418_v29  ;;  %v1470_v31 = vmul.f32 %v3608_v7, %v1448_v39 }
0x129d   :  { %v1458_v42 = vrot.slane %v1450_v53, %v3248_v58 }
0x129f   :  { %v1465_v43 = vrot.slane %v1458_v42, %v3248_v58 }
0x12a1   :  { %1466 = vrot.lane.b32.xlu0 %v1465_v43, %s3095_s19 }
0x12cb   :  { %v3640_v62 = vpop.f32.mrb[28].mxu1 }
0x12cc   :  { %v2785_v46 = vpop.f32.mrb[29].mxu1 }
0x12cd   :  { %v1525_v47 = vpop.f32.mrb[30].mxu1 }
0x12ce   :  { %v2786_v19 = vpop.f32.mrb[31].mxu1 }
0x12d3   :  { %v1647_v49 = vpop.f32.mrb[32].mxu1 }
0x12d4   :  { %v1653_v41 = vadd.f32 %v1647_v49, %v194_v48  ;;  %v2801_v9 = vpop.f32.mrb[33].mxu1 }
0x12d5   :  { %v1650_v59 = vpop.f32.mrb[34].mxu1 }
0x12d6   :  { %2980 = vtanh.f32 %v1653_v41  ;;  %v2802_v26 = vpop.f32.mrb[35].mxu1  ;;  %v2562_v55 = vmul.f32 -1.442695, %v1653_v41 }
0x12d8   :  { %2982 = vpow2.f32 %v2562_v55 }
0x12e0   :  { %v2981_v61 = vpop.eup %2980 }
0x12e1   :  { %1663 = vrot.lane.b32.xlu0 %v2981_v61, %s3094_s18 }
0x12e2   :  { %v2983_v10 = vpop.eup %2982 }
0x12e3   :  { %v1657_v25 = vadd.f32 1.0, %v2983_v10 }
0x12e5   :  { %2984 = vrcp.f32 %v1657_v25 }
0x12ef   :  { %v2985_v16 = vpop.eup %2984 }
0x12f0   :  { %v1661_v52 = vmul.f32 %v2985_v16, %v3585_v2  ;;  %v3674_v2 = vld [vmem:[%s3915_s5 + $0x8] sm:$0xff]  }
0x1313   :  { %v1467_v44 = vpop.permute.xlu0 %1466 }
0x1314   :  { %v1469_v37 = vsub.f32 %v3648_v5, %v1467_v44 }
0x1316   :  { %v1475_v45 = vrot.slane %v1469_v37, %v3263_v3 }
0x1318   :  { %1476 = vrot.lane.b32.xlu1 %v1475_v45, %s3097_s27 }
0x1353   :  { %v1664_v6 = vpop.permute.xlu0 %1663 }
0x1354   :  { %v1666_v30 = vmul.f32 %v2985_v16, %v1664_v6 }
0x1356   :  { %1668 = vrot.lane.b32.xlu0 %v1666_v30, %s3095_s19 }
0x138a   :  { %v1477_v17 = vpop.permute.xlu1 %1476 }
0x138b   :  { %v1479_v20 = vadd.f32 %v1477_v17, %v1470_v31 }
0x138d   :  { %v1480_v21 = vpack.c.bf16 %v1479_v20, %v1479_v20 }
0x138f   :  { %1529 = vrot.lane.b32.xlu1 %v1480_v21, %s3095_s19 }
0x13c8   :  { %v1669_v23 = vpop.permute.xlu0 %1668 }
0x13c9   :  { %v3657_v60 = vadd.f32 %v1669_v23, %v1661_v52 }
0x13cb   :  { %2986 = vtanh.f32 %v3657_v60 }
0x13d5   :  { %v2987_v57 = vpop.eup %2986 }
0x13d6   :  { %1674 = vrot.lane.b32.xlu1 %v2987_v57, %s3094_s18 }
0x1401   :  { %v1530_v50 = vpop.permute.xlu1 %1529 }
0x1402   :  { %2792 = vmatmul.mubr.msk.bf16.vlgmr.msra.gmra.mrb[32].mxu0 %vm225_vm6, %v1530_v50 }
0x1403   :  { %2804 = vmatpush3.bf16.msra.mxu0 %v3665_v24  ;;  %2807 = vmatprep.mubr.msk.bf16.mxu0 %vm3092_vm2, %v3091_v0 }
0x1404   :  { %2805 = vmatprep.subr.bf16.mxu0 %v3091_v0 }
0x1407   :  { %2806 = vmatpush3.bf16.msra.mxu0 %v3674_v2 }
0x1408   :  { %2819 = vmatprep.subr.bf16.mxu0 %v3091_v0 }
0x1448   :  { %v1675_v29 = vpop.permute.xlu1 %1674 }
0x1449   :  { %v1677_v13 = vmul.f32 %v2985_v16, %v1675_v29 }
0x144b   :  { %v3680_v34 = vsub.f32 %v1677_v13, %v1678_v33  ;;  %v1328_v33 = vsub.f32 %v3594_v11, %v3369_v4 }
0x144d   :  { %v1680_v8 = vsub.f32 %v3680_v34, %v3236_v32  ;;  %vm1329_vm0 = vcmp.gt.f32.partialorder %v1328_v33, 0.0 }
0x144f   :  { %vm1681_vm15 = vcmp.gt.f32.partialorder %v1680_v8, 0.0 }
0x1450   :  { %v3685_v14 = vsel %vm1681_vm15, 1.0, %v3091_v0 }
0x1451   :  { %v1684_v12 = vsel %vm300_vm4, %v3685_v14, 0.0 }
0x1452   :  { %v1685_v35 = vrot.slane %v1684_v12, 4 }
0x1454   :  { %v1686_v36 = vadd.f32 %v1685_v35, %v1684_v12 }
0x1456   :  { %v1687_v38 = vrot.slane %v1686_v36, 2 }
0x1458   :  { %v1688_v40 = vadd.f32 %v1687_v38, %v1686_v36 }
0x145a   :  { %v1689_v63 = vrot.slane %v1688_v40, 1 }
0x145c   :  { %v1690_v39 = vadd.f32 %v1689_v63, %v1688_v40 }
0x145e   :  { %v1691_v7 = vmul.f32 0.125, %v1690_v39 }
0x1460   :  { %v1692_v53 = vmul.f32 %v1691_v7, %v1691_v7 }
0x1462   :  { %v1693_v42 = vsub.f32 %v1691_v7, %v1692_v53 }
0x1464   :  { %v1694_v43 = vadd.f32 1e-05, %v1693_v42 }
0x1466   :  { %2988 = vrsqrt.f32 %v1694_v43  ;;  %v3755_v43 = vld [vmem:[%s3914_s4 + $0x8] sm:$0xff]  }
0x1470   :  { %v2989_v46 = vpop.eup %2988 }
0x1471   :  { %v1703_v47 = vrot.slane %v2989_v46, %v3248_v58 }
0x1473   :  { %v1710_v19 = vrot.slane %v1703_v47, %v3248_v58 }
0x1475   :  { %1711 = vrot.lane.b32.xlu0 %v1710_v19, %s3095_s19 }
0x14d5   :  { %v1568_v48 = vpop.f32.mrb[32].mxu0 }
0x14d6   :  { %v1569_v49 = vadd.f32 %v1568_v48, %v3640_v62  ;;  %v2793_v41 = vpop.f32.mrb[33].mxu0 }
0x14d7   :  { %v1571_v9 = vpop.f32.mrb[34].mxu0 }
0x14d8   :  { %v1574_v59 = vadd.f32 %v3350_v22, %v1569_v49  ;;  %v2794_v26 = vpop.f32.mrb[35].mxu0 }
0x14da   :  { %2990 = vtanh.f32 %v1574_v59  ;;  %v2559_v55 = vmul.f32 -1.442695, %v1574_v59  ;;  %v3762_v59 = vld [vmem:[%s3916_s6] ss:$0 sm:$0xff] }
0x14dc   :  { %2992 = vpow2.f32 %v2559_v55 }
0x14e4   :  { %v2991_v61 = vpop.eup %2990 }
0x14e5   :  { %1584 = vrot.lane.b32.xlu1 %v2991_v61, %s3094_s18 }
0x14e6   :  { %v2993_v10 = vpop.eup %2992 }
0x14e7   :  { %v1712_v44 = vpop.permute.xlu0 %1711  ;;  %v1578_v62 = vadd.f32 1.0, %v2993_v10 }
0x14e8   :  { %v1714_v37 = vmul.f32 %v3632_v1, %v1712_v44 }
0x14e9   :  { %2994 = vrcp.f32 %v1578_v62 }
0x14ea   :  { %v1719_v45 = vrot.slane %v1714_v37, %v3263_v3  ;;  %v199_v37 = vadd.f32 %v3572_v27, %v3325_v28 }
0x14ec   :  { %1720 = vrot.lane.b32.xlu0 %v1719_v45, %s3097_s27 }
0x14f3   :  { %v2995_v25 = vpop.eup %2994 }
0x14f4   :  { %v1582_v20 = vmul.f32 %v2995_v25, %v3581_v56  ;;  %v2553_v56 = vsel %vm1329_vm0, 1.0, %v3091_v0 }
0x14f5   :  { %v1599_v12 = vmul.f32 %v2553_v56, %v3369_v4 }
0x1557   :  { %v1585_v16 = vpop.permute.xlu1 %1584 }
0x1558   :  { %v1587_v22 = vmul.f32 %v2995_v25, %v1585_v16 }
0x155a   :  { %1589 = vrot.lane.b32.xlu1 %v1587_v22, %s3095_s19 }
0x155e   :  { %v1721_v6 = vpop.permute.xlu0 %1720 }
0x155f   :  { %v1723_v30 = vmul.f32 %v1721_v6, %v1691_v7  ;;  %v1743_v8 = vmul.f32 %v3685_v14, %v1721_v6  ;;  %v1879_v7 = vpack.c.bf16 %v3680_v34, %v3680_v34  ;;  %v3746_v34 = vld [vmem:[%s3914_s4] sm:$0xff]  }
0x1561   :  { %v1731_v31 = vrot.slane %v1723_v30, %v3248_v58 }
0x1563   :  { %v1738_v17 = vrot.slane %v1731_v31, %v3248_v58 }
0x1565   :  { %1739 = vrot.lane.b32.xlu0 %v1738_v17, %s3095_s19 }
0x15cc   :  { %v1590_v21 = vpop.permute.xlu1 %1589 }
0x15cd   :  { %v3703_v52 = vadd.f32 %v1590_v21, %v1582_v20 }
0x15cf   :  { %2996 = vtanh.f32 %v3703_v52 }
0x15d7   :  { %v1740_v23 = vpop.permute.xlu0 %1739 }
0x15d8   :  { %v1742_v57 = vsub.f32 %v3648_v5, %v1740_v23 }
0x15d9   :  { %v2997_v50 = vpop.eup %2996 }
0x15da   :  { %v1748_v29 = vrot.slane %v1742_v57, %v3263_v3  ;;  %1595 = vrot.lane.b32.xlu1 %v2997_v50, %s3094_s18 }
0x15dc   :  { %1749 = vrot.lane.b32.xlu0 %v1748_v29, %s3097_s27 }
0x164c   :  { %v1596_v13 = vpop.permute.xlu1 %1595 }
0x164d   :  { %v1598_v35 = vmul.f32 %v2995_v25, %v1596_v13 }
0x164e   :  { %v1750_v36 = vpop.permute.xlu0 %1749 }
0x164f   :  { %v3715_v38 = vsub.f32 %v1598_v35, %v1599_v12  ;;  %v1752_v40 = vadd.f32 %v1750_v36, %v1743_v8 }
0x1651   :  { %v3719_v63 = vadd.f32 %v3715_v38, %v3598_v18  ;;  %v1753_v39 = vpack.c.bf16 %v1752_v40, %v1752_v40  ;;  %v1754_v11 = vpack.c.bf16 %v3715_v38, %v3715_v38 }
0x1653   :  { %1802 = vrot.lane.b32.xlu0 %v1753_v39, %s3095_s19  ;;  %1756 = vrot.lane.b32.xlu1 %v1754_v11, %s3095_s19 }
0x1657   :  { %1881 = vrot.lane.b32.xlu1 %v1879_v7, %s3095_s19 }
0x16c5   :  { %v1803_v53 = vpop.permute.xlu0 %1802  ;;  %v1757_v42 = vpop.permute.xlu1 %1756 }
0x16c6   :  { %2808 = vmatmul.mubr.msk.bf16.vlgmr.msra.gmra.mrb[36].mxu0 %vm225_vm6, %v1757_v42  ;;  %2816 = vmatmul.mubr.msk.bf16.vlgmr.msra.gmra.mrb[36].mxu1 %vm225_vm6, %v1803_v53 }
0x16c7   :  { %2820 = vmatpush3.bf16.msra.mxu0 %v3542_v15  ;;  %2823 = vmatprep.mubr.msk.bf16.mxu0 %vm3092_vm2, %v3091_v0 }
0x16c8   :  { %2821 = vmatprep.subr.bf16.mxu0 %v3091_v0  ;;  %2828 = vmatpush3.bf16.msra.mxu1 %v3665_v24 }
0x16c9   :  { %2829 = vmatprep.subr.bf16.mxu1 %v3091_v0  ;;  %2831 = vmatprep.mubr.msk.bf16.mxu1 %vm3092_vm2, %v3091_v0  ;;  %v1882_v18 = vpop.permute.xlu1 %1881 }
0x16cb   :  { %2822 = vmatpush3.bf16.msra.mxu0 %v3555_v51 }
0x16cc   :  { %2830 = vmatpush3.bf16.msra.mxu1 %v3674_v2  ;;  %2835 = vmatprep.subr.bf16.mxu0 %v3091_v0 }
0x16cd   :  { %2843 = vmatprep.subr.bf16.mxu1 %v3091_v0 }
0x16ce   :  { %2824 = vmatmul.mubr.msk.bf16.vlgmr.msra.gmra.mrb[40].mxu0 %vm225_vm6, %v1882_v18 }
0x16cf   :  { %2836 = vmatpush3.bf16.msra.mxu0 %v3746_v34  ;;  %2839 = vmatprep.mubr.msk.bf16.mxu0 %vm3092_vm2, %v3091_v0 }
0x16d0   :  { %2837 = vmatprep.subr.bf16.mxu0 %v3091_v0 }
0x16d3   :  { %2838 = vmatpush3.bf16.msra.mxu0 %v3755_v43 }
0x16d4   :  { %2851 = vmatprep.subr.bf16.mxu0 %v3091_v0 }
0x1799   :  { %v1795_v46 = vpop.f32.mrb[36].mxu0  ;;  %v1841_v47 = vpop.f32.mrb[36].mxu1 }
0x179a   :  { %v1842_v19 = vadd.f32 %v1841_v47, %v1795_v46  ;;  %v2809_v48 = vpop.f32.mrb[37].mxu0  ;;  %v2817_v49 = vpop.f32.mrb[37].mxu1 }
0x179b   :  { %v1798_v41 = vpop.f32.mrb[38].mxu0  ;;  %v1844_v9 = vpop.f32.mrb[38].mxu1 }
0x179c   :  { %v1847_v26 = vadd.f32 %v3762_v59, %v1842_v19  ;;  %v2810_v61 = vpop.f32.mrb[39].mxu0  ;;  %v2818_v44 = vpop.f32.mrb[39].mxu1 }
0x179e   :  { %2998 = vtanh.f32 %v1847_v26  ;;  %v2566_v6 = vmul.f32 -1.442695, %v1847_v26 }
0x17a1   :  { %v1920_v45 = vpop.f32.mrb[40].mxu0 }
0x17a2   :  { %v1926_v55 = vadd.f32 %v1920_v45, %v199_v37  ;;  %v2825_v10 = vpop.f32.mrb[41].mxu0 }
0x17a3   :  { %v1923_v62 = vpop.f32.mrb[42].mxu0 }
0x17a4   :  { %3000 = vtanh.f32 %v1926_v55  ;;  %v2826_v25 = vpop.f32.mrb[43].mxu0  ;;  %v2569_v30 = vmul.f32 -1.442695, %v1926_v55 }
0x17a5   :  { %3002 = vpow2.f32 %v2566_v6 }
0x17a6   :  { %3004 = vpow2.f32 %v2569_v30 }
0x17a8   :  { %v2999_v16 = vpop.eup %2998 }
0x17a9   :  { %1857 = vrot.lane.b32.xlu0 %v2999_v16, %s3094_s18 }
0x17ae   :  { %v3001_v22 = vpop.eup %3000 }
0x17af   :  { %1936 = vrot.lane.b32.xlu1 %v3001_v22, %s3094_s18  ;;  %v3003_v31 = vpop.eup %3002 }
0x17b0   :  { %v1851_v17 = vadd.f32 1.0, %v3003_v31  ;;  %v3005_v20 = vpop.eup %3004 }
0x17b1   :  { %v1930_v28 = vadd.f32 1.0, %v3005_v20 }
0x17b2   :  { %3006 = vrcp.f32 %v1851_v17 }
0x17b3   :  { %3008 = vrcp.f32 %v1930_v28 }
0x17bc   :  { %v3007_v21 = vpop.eup %3006 }
0x17bd   :  { %v3009_v50 = vpop.eup %3008  ;;  %v1855_v56 = vmul.f32 %v3007_v21, %v3703_v52  ;;  %v1601_v52 = vsub.f32 %v3715_v38, %v3369_v4  ;;  %v1951_v38 = vmul.f32 %v3685_v14, %v3236_v32 }
0x17be   :  { %v1934_v12 = vmul.f32 %v3009_v50, %v3657_v60 }
0x17bf   :  { %vm1602_vm1 = vcmp.gt.f32.partialorder %v1601_v52, 0.0 }
0x17c0   :  { %v2560_v11 = vsel %vm1602_vm1, 1.0, %v3091_v0 }
0x17c1   :  { %v1872_v60 = vmul.f32 %v2560_v11, %v3369_v4 }
0x181b   :  { %v1858_v23 = vpop.permute.xlu0 %1857 }
0x181c   :  { %v1860_v57 = vmul.f32 %v3007_v21, %v1858_v23 }
0x181e   :  { %1862 = vrot.lane.b32.xlu0 %v1860_v57, %s3095_s19 }
0x1821   :  { %v1937_v29 = vpop.permute.xlu1 %1936 }
0x1822   :  { %v1939_v33 = vmul.f32 %v3009_v50, %v1937_v29  ;;  %v202_v29 = vadd.f32 %v3572_v27, %v3329_v54 }
0x1824   :  { %1941 = vrot.lane.b32.xlu1 %v1939_v33, %s3095_s19 }
0x1890   :  { %v1863_v13 = vpop.permute.xlu0 %1862 }
0x1891   :  { %v3772_v8 = vadd.f32 %v1863_v13, %v1855_v56 }
0x1893   :  { %3010 = vtanh.f32 %v3772_v8 }
0x1896   :  { %v1942_v35 = vpop.permute.xlu1 %1941 }
0x1897   :  { %v3776_v36 = vadd.f32 %v1942_v35, %v1934_v12 }
0x1899   :  { %3012 = vtanh.f32 %v3776_v36 }
0x189d   :  { %v3011_v40 = vpop.eup %3010 }
0x189e   :  { %1868 = vrot.lane.b32.xlu0 %v3011_v40, %s3094_s18 }
0x18a3   :  { %v3013_v39 = vpop.eup %3012 }
0x18a4   :  { %1947 = vrot.lane.b32.xlu1 %v3013_v39, %s3094_s18 }
0x1910   :  { %v1869_v7 = vpop.permute.xlu0 %1868 }
0x1911   :  { %v1871_v53 = vmul.f32 %v3007_v21, %v1869_v7 }
0x1913   :  { %v3785_v42 = vsub.f32 %v1871_v53, %v1872_v60 }
0x1915   :  { %v3789_v18 = vadd.f32 %v3785_v42, %v3719_v63  ;;  %v2027_v46 = vpack.c.bf16 %v3785_v42, %v3785_v42 }
0x1916   :  { %v1948_v47 = vpop.permute.xlu1 %1947 }
0x1917   :  { %v1950_v19 = vmul.f32 %v3009_v50, %v1948_v47  ;;  %2029 = vrot.lane.b32.xlu0 %v2027_v46, %s3095_s19 }
0x1919   :  { %v1952_v48 = vsub.f32 %v1950_v19, %v1951_v38 }
0x191b   :  { %v1953_v49 = vsub.f32 %v1952_v48, %v3236_v32  ;;  %v2152_v41 = vpack.c.bf16 %v1952_v48, %v1952_v48 }
0x191d   :  { %vm1954_vm3 = vcmp.gt.f32.partialorder %v1953_v49, 0.0  ;;  %2154 = vrot.lane.b32.xlu1 %v2152_v41, %s3095_s19 }
0x191e   :  { %v3799_v63 = vsel %vm1954_vm3, 1.0, %v3091_v0 }
0x191f   :  { %v1957_v9 = vsel %vm300_vm4, %v3799_v63, 0.0 }
0x1920   :  { %v1958_v26 = vrot.slane %v1957_v9, 4 }
0x1922   :  { %v1959_v61 = vadd.f32 %v1958_v26, %v1957_v9 }
0x1924   :  { %v1960_v44 = vrot.slane %v1959_v61, 2 }
0x1926   :  { %v1961_v14 = vadd.f32 %v1960_v44, %v1959_v61  ;;  %v2224_v44 = vmul.f32 %v3799_v63, %v3236_v32 }
0x1928   :  { %v1962_v37 = vrot.slane %v1961_v14, 1 }
0x192a   :  { %v1963_v45 = vadd.f32 %v1962_v37, %v1961_v14 }
0x192c   :  { %v1964_v55 = vmul.f32 0.125, %v1963_v45 }
0x192e   :  { %v1965_v10 = vmul.f32 %v1964_v55, %v1964_v55 }
0x1930   :  { %v1966_v62 = vsub.f32 %v1964_v55, %v1965_v10 }
0x1932   :  { %v1967_v25 = vadd.f32 1e-05, %v1966_v62 }
0x1934   :  { %3014 = vrsqrt.f32 %v1967_v25 }
0x193e   :  { %v3015_v16 = vpop.eup %3014 }
0x193f   :  { %v1976_v22 = vrot.slane %v3015_v16, %v3248_v58 }
0x1941   :  { %v1983_v6 = vrot.slane %v1976_v22, %v3248_v58 }
0x1943   :  { %1984 = vrot.lane.b32.xlu0 %v1983_v6, %s3095_s19 }
0x1989   :  { %v2030_v30 = vpop.permute.xlu0 %2029 }
0x198a   :  { %2832 = vmatmul.mubr.msk.bf16.vlgmr.msra.gmra.mrb[40].mxu1 %vm225_vm6, %v2030_v30 }
0x198b   :  { %2844 = vmatpush3.bf16.msra.mxu1 %v3542_v15  ;;  %2847 = vmatprep.mubr.msk.bf16.mxu1 %vm3092_vm2, %v3091_v0 }
0x198c   :  { %2845 = vmatprep.subr.bf16.mxu1 %v3091_v0 }
0x198f   :  { %2846 = vmatpush3.bf16.msra.mxu1 %v3555_v51  ;;  %v2155_v31 = vpop.permute.xlu1 %2154 }
0x1990   :  { %2859 = vmatprep.subr.bf16.mxu1 %v3091_v0 }
0x1992   :  { %2848 = vmatmul.mubr.msk.bf16.vlgmr.msra.gmra.mrb[44].mxu1 %vm225_vm6, %v2155_v31 }
0x1993   :  { %2860 = vmatpush3.bf16.msra.mxu1 %v3746_v34  ;;  %2863 = vmatprep.mubr.msk.bf16.mxu1 %vm3092_vm2, %v3091_v0 }
0x1994   :  { %2861 = vmatprep.subr.bf16.mxu1 %v3091_v0 }
0x1997   :  { %2862 = vmatpush3.bf16.msra.mxu1 %v3755_v43 }
0x19b5   :  { %v1985_v15 = vpop.permute.xlu0 %1984 }
0x19b6   :  { %v1987_v17 = vmul.f32 %v3632_v1, %v1985_v15 }
0x19b8   :  { %v1992_v20 = vrot.slane %v1987_v17, %v3263_v3 }
0x19ba   :  { %1993 = vrot.lane.b32.xlu1 %v1992_v20, %s3097_s27 }
0x1a2c   :  { %v1994_v51 = vpop.permute.xlu1 %1993 }
0x1a2d   :  { %v1996_v28 = vmul.f32 %v1994_v51, %v1964_v55  ;;  %v2016_v47 = vmul.f32 %v3799_v63, %v1994_v51 }
0x1a2f   :  { %v2004_v21 = vrot.slane %v1996_v28, %v3248_v58 }
0x1a31   :  { %v2011_v34 = vrot.slane %v2004_v21, %v3248_v58 }
0x1a33   :  { %2012 = vrot.lane.b32.xlu0 %v2011_v34, %s3095_s19 }
0x1a5d   :  { %v3825_v23 = vpop.f32.mrb[40].mxu1 }
0x1a5e   :  { %v2833_v57 = vpop.f32.mrb[41].mxu1 }
0x1a5f   :  { %v2071_v50 = vpop.f32.mrb[42].mxu1 }
0x1a60   :  { %v2834_v43 = vpop.f32.mrb[43].mxu1 }
0x1a65   :  { %v2193_v33 = vpop.f32.mrb[44].mxu1 }
0x1a66   :  { %v2199_v56 = vadd.f32 %v2193_v33, %v202_v29  ;;  %v2849_v13 = vpop.f32.mrb[45].mxu1 }
0x1a67   :  { %v2196_v12 = vpop.f32.mrb[46].mxu1 }
0x1a68   :  { %3016 = vtanh.f32 %v2199_v56  ;;  %v2850_v35 = vpop.f32.mrb[47].mxu1  ;;  %v2576_v7 = vmul.f32 -1.442695, %v2199_v56 }
0x1a6a   :  { %3018 = vpow2.f32 %v2576_v7 }
0x1a72   :  { %v3017_v40 = vpop.eup %3016 }
0x1a73   :  { %2209 = vrot.lane.b32.xlu0 %v3017_v40, %s3094_s18 }
0x1a74   :  { %v3019_v60 = vpop.eup %3018 }
0x1a75   :  { %v2203_v54 = vadd.f32 1.0, %v3019_v60 }
0x1a77   :  { %3020 = vrcp.f32 %v2203_v54 }
0x1a81   :  { %v3021_v27 = vpop.eup %3020 }
0x1a82   :  { %v2207_v49 = vmul.f32 %v3021_v27, %v3776_v36 }
0x1aa5   :  { %v2013_v39 = vpop.permute.xlu0 %2012 }
0x1aa6   :  { %v2015_v52 = vsub.f32 %v3648_v5, %v2013_v39 }
0x1aa8   :  { %v2021_v11 = vrot.slane %v2015_v52, %v3263_v3 }
0x1aaa   :  { %2022 = vrot.lane.b32.xlu1 %v2021_v11, %s3097_s27 }
0x1ae5   :  { %v2210_v53 = vpop.permute.xlu0 %2209 }
0x1ae6   :  { %v2212_v46 = vmul.f32 %v3021_v27, %v2210_v53 }
0x1ae8   :  { %2214 = vrot.lane.b32.xlu0 %v2212_v46, %s3095_s19 }
0x1b1c   :  { %v2023_v38 = vpop.permute.xlu1 %2022 }
0x1b1d   :  { %v2025_v19 = vadd.f32 %v2023_v38, %v2016_v47 }
0x1b1f   :  { %v2026_v48 = vpack.c.bf16 %v2025_v19, %v2025_v19 }
0x1b21   :  { %2075 = vrot.lane.b32.xlu1 %v2026_v48, %s3095_s19 }
0x1b5a   :  { %v2215_v41 = vpop.permute.xlu0 %2214 }
0x1b5b   :  { %v2217_v9 = vadd.f32 %v2215_v41, %v2207_v49 }
0x1b5d   :  { %3022 = vtanh.f32 %v2217_v9 }
0x1b67   :  { %v3023_v26 = vpop.eup %3022 }
0x1b68   :  { %2220 = vrot.lane.b32.xlu1 %v3023_v26, %s3094_s18 }
0x1b93   :  { %v2076_v61 = vpop.permute.xlu1 %2075 }
0x1b94   :  { %2840 = vmatmul.mubr.msk.bf16.vlgmr.msra.gmra.mrb[44].mxu0 %vm225_vm6, %v2076_v61 }
0x1b95   :  { %2852 = vmatpush3.bf16.msra.mxu0 %v3665_v24  ;;  %2855 = vmatprep.mubr.msk.bf16.mxu0 %vm3092_vm2, %v3091_v0 }
0x1b96   :  { %2853 = vmatprep.subr.bf16.mxu0 %v3091_v0 }
0x1b99   :  { %2854 = vmatpush3.bf16.msra.mxu0 %v3674_v2 }
0x1b9a   :  { %2867 = vmatprep.subr.bf16.mxu0 %v3091_v0 }
0x1bda   :  { %v2221_v36 = vpop.permute.xlu1 %2220 }
0x1bdb   :  { %v2223_v14 = vmul.f32 %v3021_v27, %v2221_v36 }
0x1bdd   :  { %v2225_v37 = vsub.f32 %v2223_v14, %v2224_v44 }
0x1bdf   :  { %v2226_v45 = vsub.f32 %v2225_v37, %v3236_v32 }
0x1be1   :  { %vm2227_vm5 = vcmp.gt.f32.partialorder %v2226_v45, 0.0 }
0x1be2   :  { %v2577_v24 = vsel %vm2227_vm5, 1.0, %v3091_v0 }
0x1be3   :  { %v2230_v55 = vsel %vm300_vm4, %v2577_v24, 0.0 }
0x1be4   :  { %v2231_v10 = vrot.slane %v2230_v55, 4 }
0x1be6   :  { %v2232_v62 = vadd.f32 %v2231_v10, %v2230_v55 }
0x1be8   :  { %v2233_v25 = vrot.slane %v2232_v62, 2 }
0x1bea   :  { %v2234_v16 = vadd.f32 %v2233_v25, %v2232_v62 }
0x1bec   :  { %v2235_v2 = vrot.slane %v2234_v16, 1 }
0x1bee   :  { %v2236_v22 = vadd.f32 %v2235_v2, %v2234_v16 }
0x1bf0   :  { %v2237_v6 = vmul.f32 0.125, %v2236_v22 }
0x1bf2   :  { %v2238_v30 = vmul.f32 %v2237_v6, %v2237_v6 }
0x1bf4   :  { %v2239_v31 = vsub.f32 %v2237_v6, %v2238_v30 }
0x1bf6   :  { %v2240_v15 = vadd.f32 1e-05, %v2239_v31 }
0x1bf8   :  { %3024 = vrsqrt.f32 %v2240_v15 }
0x1c02   :  { %v3025_v63 = vpop.eup %3024 }
0x1c03   :  { %v2249_v17 = vrot.slane %v3025_v63, %v3248_v58 }
0x1c05   :  { %v2256_v32 = vrot.slane %v2249_v17, %v3248_v58 }
0x1c07   :  { %2257 = vrot.lane.b32.xlu0 %v2256_v32, %s3095_s19 }
0x1c67   :  { %v2114_v20 = vpop.f32.mrb[44].mxu0 }
0x1c68   :  { %v2115_v51 = vadd.f32 %v2114_v20, %v3825_v23  ;;  %v2841_v28 = vpop.f32.mrb[45].mxu0  ;;  %v2897_v20 = vld [vmem:[%s3919_s9 + $0x8] sm:$0xff]  }
0x1c69   :  { %v2117_v21 = vpop.f32.mrb[46].mxu0 }
0x1c6a   :  { %v2120_v34 = vadd.f32 %v3762_v59, %v2115_v51  ;;  %v2842_v57 = vpop.f32.mrb[47].mxu0 }
0x1c6c   :  { %3026 = vtanh.f32 %v2120_v34  ;;  %v2573_v56 = vmul.f32 -1.442695, %v2120_v34 }
0x1c6e   :  { %3028 = vpow2.f32 %v2573_v56 }
0x1c76   :  { %v3027_v50 = vpop.eup %3026 }
0x1c77   :  { %2130 = vrot.lane.b32.xlu1 %v3027_v50, %s3094_s18 }
0x1c78   :  { %v3029_v13 = vpop.eup %3028 }
0x1c79   :  { %v2258_v43 = vpop.permute.xlu0 %2257  ;;  %v2124_v23 = vadd.f32 1.0, %v3029_v13  ;;  %v2581_v13 = vld [vmem:[%s3920_s10] ss:$0 sm:$0xff] }
0x1c7a   :  { %v2260_v29 = vmul.f32 %v3632_v1, %v2258_v43 }
0x1c7b   :  { %3030 = vrcp.f32 %v2124_v23 }
0x1c7c   :  { %v2265_v33 = vrot.slane %v2260_v29, %v3263_v3 }
0x1c7e   :  { %2266 = vrot.lane.b32.xlu0 %v2265_v33, %s3097_s27 }
0x1c85   :  { %v3031_v12 = vpop.eup %3030 }
0x1c86   :  { %v2128_v7 = vmul.f32 %v3031_v12, %v3772_v8 }
0x1ce9   :  { %v2131_v35 = vpop.permute.xlu1 %2130 }
0x1cea   :  { %v2133_v40 = vmul.f32 %v3031_v12, %v2131_v35 }
0x1cec   :  { %2135 = vrot.lane.b32.xlu1 %v2133_v40, %s3095_s19 }
0x1cf0   :  { %v2267_v39 = vpop.permute.xlu0 %2266 }
0x1cf1   :  { %v2269_v52 = vmul.f32 %v2267_v39, %v2237_v6  ;;  %v2289_v19 = vmul.f32 %v2577_v24, %v2267_v39 }
0x1cf3   :  { %v2277_v11 = vrot.slane %v2269_v52, %v3248_v58 }
0x1cf5   :  { %v2284_v1 = vrot.slane %v2277_v11, %v3248_v58  ;;  %v1874_v58 = vsub.f32 %v3785_v42, %v3369_v4 }
0x1cf7   :  { %2285 = vrot.lane.b32.xlu0 %v2284_v1, %s3095_s19  ;;  %vm1875_vm4 = vcmp.gt.f32.partialorder %v1874_v58, 0.0 }
0x1cf8   :  { %v2567_v38 = vsel %vm1875_vm4, 1.0, %v3091_v0 }
0x1cf9   :  { %v2145_v48 = vmul.f32 %v2567_v38, %v3369_v4 }
0x1d5e   :  { %v2136_v60 = vpop.permute.xlu1 %2135 }
0x1d5f   :  { %v2138_v54 = vadd.f32 %v2136_v60, %v2128_v7 }
0x1d61   :  { %3032 = vtanh.f32 %v2138_v54 }
0x1d69   :  { %v2286_v27 = vpop.permute.xlu0 %2285 }
0x1d6a   :  { %v2288_v53 = vsub.f32 %v3648_v5, %v2286_v27 }
0x1d6b   :  { %v3033_v46 = vpop.eup %3032 }
0x1d6c   :  { %v2294_v47 = vrot.slane %v2288_v53, %v3263_v3  ;;  %2141 = vrot.lane.b32.xlu1 %v3033_v46, %s3094_s18 }
0x1d6e   :  { %2295 = vrot.lane.b32.xlu0 %v2294_v47, %s3097_s27 }
0x1dde   :  { %v2142_v8 = vpop.permute.xlu1 %2141 }
0x1ddf   :  { %v2144_v49 = vmul.f32 %v3031_v12, %v2142_v8 }
0x1de0   :  { %v2296_v41 = vpop.permute.xlu0 %2295 }
0x1de1   :  { %v2146_v5 = vsub.f32 %v2144_v49, %v2145_v48  ;;  %v2298_v9 = vadd.f32 %v2296_v41, %v2289_v19 }
0x1de3   :  { %v2299_v26 = vpack.c.bf16 %v2298_v9, %v2298_v9  ;;  %v2300_v3 = vpack.c.bf16 %v2146_v5, %v2146_v5  ;;  %v2151_v61 = vadd.f32 %v2146_v5, %v3789_v18  ;;  %v2147_v28 = vsub.f32 %v2146_v5, %v3369_v4 }
0x1de5   :  { %2348 = vrot.lane.b32.xlu0 %v2299_v26, %s3095_s19  ;;  %2302 = vrot.lane.b32.xlu1 %v2300_v3, %s3095_s19 }
0x1e57   :  { %v2349_v42 = vpop.permute.xlu0 %2348  ;;  %v2303_v36 = vpop.permute.xlu1 %2302 }
0x1e58   :  { %2856 = vmatmul.mubr.msk.bf16.vlgmr.msra.gmra.mrb[48].mxu0 %vm225_vm6, %v2303_v36  ;;  %2864 = vmatmul.mubr.msk.bf16.vlgmr.msra.gmra.mrb[48].mxu1 %vm225_vm6, %v2349_v42 }
0x1e59   :  { %2871 = vmatprep.mubr.msk.bf16.mxu0 %vm3092_vm2, %v3091_v0  ;;  %vm2148_vm2 = vcmp.gt.f32.partialorder %v2147_v28, 0.0 }
0x1e5a   :  { %v2574_v21 = vsel %vm2148_vm2, 1.0, %v3091_v0 }
0x1e5b   :  { %v2418_v57 = vmul.f32 %v2574_v21, %v3369_v4 }
0x1f2b   :  { %v2341_v44 = vpop.f32.mrb[48].mxu0  ;;  %v2387_v14 = vpop.f32.mrb[48].mxu1 }
0x1f2c   :  { %v2388_v37 = vadd.f32 %v2387_v14, %v2341_v44  ;;  %v2857_v45 = vpop.f32.mrb[49].mxu0  ;;  %v2865_v24 = vpop.f32.mrb[49].mxu1 }
0x1f2d   :  { %v2344_v55 = vpop.f32.mrb[50].mxu0  ;;  %v2390_v18 = vpop.f32.mrb[50].mxu1 }
0x1f2e   :  { %v2393_v10 = vadd.f32 %v3762_v59, %v2388_v37  ;;  %v2858_v62 = vpop.f32.mrb[51].mxu0  ;;  %v2866_v25 = vpop.f32.mrb[51].mxu1  ;;  %v2896_v59 = vld [vmem:[%s3919_s9] sm:$0xff]  }
0x1f2f   :  { %2868 = vmatpush3.bf16.msra.mxu0 %v2896_v59 }
0x1f30   :  { %3034 = vtanh.f32 %v2393_v10  ;;  %v2580_v2 = vmul.f32 -1.442695, %v2393_v10  ;;  %2869 = vmatprep.subr.bf16.mxu0 %v3091_v0 }
0x1f32   :  { %3036 = vpow2.f32 %v2580_v2 }
0x1f33   :  { %2870 = vmatpush3.bf16.msra.mxu0 %v2897_v20 }
0x1f3a   :  { %v3035_v16 = vpop.eup %3034 }
0x1f3b   :  { %2403 = vrot.lane.b32.xlu1 %v3035_v16, %s3094_s18 }
0x1f3c   :  { %v3037_v22 = vpop.eup %3036 }
0x1f3d   :  { %v2397_v6 = vadd.f32 1.0, %v3037_v22 }
0x1f3f   :  { %3038 = vrcp.f32 %v2397_v6 }
0x1f49   :  { %v3039_v30 = vpop.eup %3038 }
0x1f4a   :  { %v2401_v63 = vmul.f32 %v3039_v30, %v2138_v54 }
0x1fad   :  { %v2404_v31 = vpop.permute.xlu1 %2403 }
0x1fae   :  { %v2406_v15 = vmul.f32 %v3039_v30, %v2404_v31 }
0x1fb0   :  { %2408 = vrot.lane.b32.xlu0 %v2406_v15, %s3095_s19 }
0x2022   :  { %v2409_v17 = vpop.permute.xlu0 %2408 }
0x2023   :  { %v2411_v32 = vadd.f32 %v2409_v17, %v2401_v63 }
0x2025   :  { %3040 = vtanh.f32 %v2411_v32 }
0x202f   :  { %v3041_v51 = vpop.eup %3040 }
0x2030   :  { %2414 = vrot.lane.b32.xlu1 %v3041_v51, %s3094_s18 }
0x20a2   :  { %v2415_v34 = vpop.permute.xlu1 %2414 }
0x20a3   :  { %v2417_v50 = vmul.f32 %v3039_v30, %v2415_v34 }
0x20a5   :  { %v2419_v43 = vsub.f32 %v2417_v50, %v2418_v57 }
0x20a7   :  { %v2420_v29 = vadd.f32 %v2419_v43, %v2151_v61 }
0x20a9   :  { %v2421_v33 = vpack.c.bf16 %v2420_v29, %v2420_v29 }
0x20ab   :  { %2434 = vrot.lane.b32.xlu0 %v2421_v33, %s3095_s19 }
0x211d   :  { %v2435_v56 = vpop.permute.xlu0 %2434 }
0x211e   :  { %2872 = vmatmul.mubr.msk.bf16.vlgmr.msra.gmra.mrb[52].mxu0 %vm225_vm6, %v2435_v56 }
0x21f1   :  { %v2485_v23 = vpop.f32.mrb[52].mxu0 }
0x21f2   :  { %v2486_v0 = vadd.f32 %v2581_v13, %v2485_v23  ;;  %v2873_v12 = vpop.f32.mrb[53].mxu0 }
0x21f3   :  { %v2488_v4 = vpop.f32.mrb[54].mxu0 }
0x21f4   :  { %v2874_v35 = vpop.f32.mrb[55].mxu0  ;;  %2492 = vst.msk [vmem:[#allocation5] sm:$0xff] %vm2491_vm7, %v2486_v0 }
0x21f5   :  { %3075 = shalt.err (!%p3072_p9)
}
0x21f6   :  { %s3076_s10 = scalar_lea.hbm %s3922_s12, 128 }
0x21f7   :  { %p3077_p10 = scmp.ne.s32.totalorder %s3922_s12, %s3076_s10  ;;  %p3080_p11 = scmp.lt.u32.totalorder %s3076_s10, %s3922_s12 }
0x21f9   :  { %p3082_p12 = pnand %p3080_p11, %p3077_p10 }
0x21fb   :  { %3085 = shalt.err (!%p3082_p12)
}
0x21fc   :  { %2502 = dma.vmem_to_hbm [thread:$0]  %s2500_s21, 128, %s3922_s12, [#allocation3]  }
0x21fd   :  { %3088 = dma.done.wait [#allocation3], 128  }
0x21fe   :  { %3089 = vsyncadd [#allocation3], 4294967168 }
0x21ff   :  { %2506 = vsyncpa [#allocation3], 1 }
0x2200   :  { %2507 = vsyncpa [#allocation4], 1 }

</bundles_post_ra>
